<compile_context>
chip_gen: v5e
topology: v5e:2x2
jax: 0.10.0
libtpu: 0.0.40
codegen_flags: <defaults>
</compile_context>

<pallas_src>
import functools
import math

import jax
import jax.numpy as jnp
from jax.experimental import pallas as pl
from jax.experimental.pallas import tpu as pltpu

EPS = 1e-5
LANE = 128


def _round_up(x, m):
    return (x + m - 1) // m * m


# ---------------------------------------------------------------------------
# In-kernel LayerNorm over the last two dims of each sample.
# ---------------------------------------------------------------------------
def _layernorm_per_sample(y, g, b, inv_cnt, pad_elems):
    """Two-pass LayerNorm over (L, n_pad) of each sample.

    y: (TB, L, n_pad) f32;  g, b: (L, n_pad) f32 (zero in lane-padded columns).
    inv_cnt = 1 / (L * n_out_true).  Lane-padded columns of y are exactly zero,
    so sum(y) is unaffected; the centered second moment picks up
    pad_elems * mu^2 from those columns, which is subtracted analytically.
    """
    mu = jnp.sum(y, axis=(-2, -1), keepdims=True) * inv_cnt
    d = y - mu
    var = jnp.sum(d * d, axis=(-2, -1), keepdims=True) * inv_cnt
    if pad_elems:  # static Python branch (pad_elems is a compile-time float)
        var = jnp.maximum(var - (pad_elems * inv_cnt) * (mu * mu), 0.0)
    inv = jax.lax.rsqrt(var + EPS)
    return d * inv * g[None] + b[None]


# ---------------------------------------------------------------------------
# Kernel bodies.  x_ref is the flattened (tb*L, n_feat) block; o_ref is the
# (tb, L, n_pad) block.  All matmuls accumulate in f32; elementwise math f32.
# ---------------------------------------------------------------------------
def _linear_res_kernel_transform(x_ref, w1t_ref, w2_ref,
                                 g1_ref, b1_ref, g2_ref, b2_ref,
                                 gt_ref, bt_ref, o_ref, *, inv_cnt, pad_elems):
    tb, L, n_pad = o_ref.shape
    mxu_dt = w2_ref.dtype                       # bf16 or f32, set in prepare_params

    x2 = x_ref[...].astype(mxu_dt)              # (tb*L, n_in); already bf16 via wrapper
    # Fused first-layer + skip-transform matmul: x @ [w1 | wt] (shared LHS push).
    hs = jnp.dot(x2, w1t_ref[...], preferred_element_type=jnp.float32)  # (tb*L, 2*n_pad)
    h = hs[:, :n_pad].reshape(tb, L, n_pad)     # split on a lane-tile boundary
    s = hs[:, n_pad:].reshape(tb, L, n_pad)

    h = jnp.maximum(
        _layernorm_per_sample(h, g1_ref[...], b1_ref[...], inv_cnt, pad_elems), 0.0)
    h2 = jnp.dot(h.reshape(tb * L, n_pad).astype(mxu_dt), w2_ref[...],
                 preferred_element_type=jnp.float32).reshape(tb, L, n_pad)
    h2 = _layernorm_per_sample(h2, g2_ref[...], b2_ref[...], inv_cnt, pad_elems)
    s = _layernorm_per_sample(s, gt_ref[...], bt_ref[...], inv_cnt, pad_elems)
    o_ref[...] = jnp.maximum(h2 + s, 0.0).astype(o_ref.dtype)


def _linear_res_kernel_identity(x_ref, w1_ref, w2_ref,
                                g1_ref, b1_ref, g2_ref, b2_ref, o_ref,
                                *, inv_cnt, pad_elems):
    tb, L, n_pad = o_ref.shape
    mxu_dt = w2_ref.dtype

    x2 = x_ref[...]                              # (tb*L, n_pad) f32 (residual needs f32)
    h = jnp.dot(x2.astype(mxu_dt), w1_ref[...],
                preferred_element_type=jnp.float32).reshape(tb, L, n_pad)
    h = jnp.maximum(
        _layernorm_per_sample(h, g1_ref[...], b1_ref[...], inv_cnt, pad_elems), 0.0)
    h2 = jnp.dot(h.reshape(tb * L, n_pad).astype(mxu_dt), w2_ref[...],
                 preferred_element_type=jnp.float32).reshape(tb, L, n_pad)
    h2 = _layernorm_per_sample(h2, g2_ref[...], b2_ref[...], inv_cnt, pad_elems)
    o_ref[...] = jnp.maximum(h2 + x2.reshape(tb, L, n_pad), 0.0).astype(o_ref.dtype)


# ---------------------------------------------------------------------------
# Wrapper-side helpers.
# ---------------------------------------------------------------------------
def _vmem_limit_bytes():
    """~75% of this generation's VMEM (96 MiB on v5e/v6e, 48 MiB on v7x)."""
    try:
        cap = pltpu.get_tpu_info().vmem_capacity_bytes
    except Exception:                            # query unavailable -> safe default
        cap = 64 * 1024 * 1024
    return max(32 * 1024 * 1024, int(cap) * 3 // 4)


def _const_spec(shape, single_buffer):
    """Whole-array block, same block every grid step (fetched once)."""
    nd = len(shape)
    idx = lambda b, nd=nd: (0,) * nd
    if single_buffer:
        # Constant blocks are never re-fetched: single-buffer them instead of
        # allocating a dead second pipeline buffer.
        return pl.BlockSpec(shape, idx, pipeline_mode=pl.Buffered(1))
    return pl.BlockSpec(shape, idx)


def _pick_tb(B, L, tb_req):
    """Pick the per-step batch tile.

    (a) tb*L % 8 == 0 (sublane tiling of the flattened (tb*L, n) x block),
    (b) >= 2 grid steps when possible so both v7x TensorCores get work,
    (c) prefer a tb that divides B so the wrapper never pads the batch.
    """
    step = 8 // math.gcd(L, 8)                   # tb granularity
    cap = _round_up(B, step)
    tb = min(_round_up(max(1, tb_req), step), cap)
    if tb >= cap and B >= 2 * step:              # single step would idle one TC
        tb = _round_up(pl.cdiv(B, 2), step)
    d = tb                                       # largest step-multiple dividing B
    while d >= step and B % d:
        d -= step
    if d >= step and 2 * d >= tb:                # don't shrink the tile too far
        tb = d
    return tb


def prepare_params(params, *, mxu_dtype=jnp.bfloat16, lane_pad=True):
    """One-time parameter preprocessing (hoisted off the per-call path).

    - Linear weights are stored transposed as (in, out): kernel does x @ W
      (== PyTorch x @ weight.T).
    - n_out is zero-padded to a multiple of 128 (if lane_pad) so the fused
      [w1 | wt] split and all output stores are lane-dense.
    - Transform-path weights are fused as [w1 | wt] here, once.
    - Matmul operands cast to mxu_dtype (bf16 default); LN affines stay f32.
    """
    w1, w2 = params["w1"], params["w2"]
    n_in, n_out = w1.shape
    has_transform = n_in != n_out
    n_pad = _round_up(n_out, LANE) if lane_pad else n_out

    def pad_out(a):                              # zero-pad last dim n_out -> n_pad
        if n_pad == n_out:
            return a
        return jnp.pad(a, [(0, 0)] * (a.ndim - 1) + [(0, n_pad - n_out)])

    prep = {
        "n_in": n_in, "n_out": n_out, "n_pad": n_pad,
        "has_transform": has_transform, "mxu_dtype": jnp.dtype(mxu_dtype),
        "w2": jnp.pad(w2, ((0, n_pad - n_out), (0, n_pad - n_out))).astype(mxu_dtype),
        "g1": pad_out(params["g1"]).astype(jnp.float32),
        "b1": pad_out(params["b1"]).astype(jnp.float32),
        "g2": pad_out(params["g2"]).astype(jnp.float32),
        "b2": pad_out(params["b2"]).astype(jnp.float32),
    }
    if has_transform:
        prep["w1t"] = jnp.concatenate(
            [pad_out(w1), pad_out(params["wt"])], axis=1).astype(mxu_dtype)
        prep["gt"] = pad_out(params["gt"]).astype(jnp.float32)
        prep["bt"] = pad_out(params["bt"]).astype(jnp.float32)
    else:
        w1p = pad_out(w1)
        if n_pad != n_out:                       # x gets feature-padded on this path
            w1p = jnp.pad(w1p, ((0, n_pad - n_in), (0, 0)))
        prep["w1"] = w1p.astype(mxu_dtype)
    return prep


def linear_res_forward(x, prep, *, tb=32):
    """x: (B, L, n_in) f32.  prep: output of prepare_params().

    Returns (B, L, n_out) f32.  tb samples are processed per grid step (the
    matmul M dim is tb*L; default 32*8=256 -> one full 256-wide MXU pass).
    """
    B, L, n_in = x.shape
    n_out, n_pad = prep["n_out"], prep["n_pad"]
    has_transform = prep["has_transform"]
    mxu_dtype = prep["mxu_dtype"]
    assert n_in == prep["n_in"], "x feature dim does not match prepared params"

    if has_transform:
        # x only feeds matmuls on this path -> bf16 halves its DMA.
        x_in = x.astype(mxu_dtype)
        n_feat = n_in
    else:
        x_in = x                                 # identity residual needs f32 x
        if n_pad != n_out:                       # only when n_out % 128 != 0
            x_in = jnp.pad(x, ((0, 0), (0, 0), (0, n_pad - n_in)))
        n_feat = n_pad

    tb = _pick_tb(B, L, tb)
    nb = pl.cdiv(B, tb)
    b_pad = nb * tb
    if b_pad != B:                               # only when no divisor tb exists
        x_in = jnp.pad(x_in, ((0, b_pad - B), (0, 0), (0, 0)))
    x_flat = x_in.reshape(b_pad * L, n_feat)     # free, contiguous reshape

    inv_cnt = 1.0 / float(L * n_out)
    pad_elems = float(L * (n_pad - n_out))

    if has_transform:
        kernel = functools.partial(_linear_res_kernel_transform,
                                   inv_cnt=inv_cnt, pad_elems=pad_elems)
        args = (x_flat, prep["w1t"], prep["w2"],
                prep["g1"], prep["b1"], prep["g2"], prep["b2"],
                prep["gt"], prep["bt"])
    else:
        kernel = functools.partial(_linear_res_kernel_identity,
                                   inv_cnt=inv_cnt, pad_elems=pad_elems)
        args = (x_flat, prep["w1"], prep["w2"],
                prep["g1"], prep["b1"], prep["g2"], prep["b2"])

    x_spec = pl.BlockSpec((tb * L, n_feat), lambda b: (b, 0))
    o_spec = pl.BlockSpec((tb, L, n_pad), lambda b: (b, 0, 0))

    def _call(single_buffer_consts):
        in_specs = [x_spec] + [_const_spec(a.shape, single_buffer_consts)
                               for a in args[1:]]
        return pl.pallas_call(
            kernel,
            out_shape=jax.ShapeDtypeStruct((b_pad, L, n_pad), jnp.float32),
            grid_spec=pltpu.PrefetchScalarGridSpec(
                num_scalar_prefetch=0,
                grid=(nb,),
                in_specs=in_specs,
                out_specs=o_spec,
            ),
            compiler_params=pltpu.CompilerParams(
                dimension_semantics=("parallel",),
                vmem_limit_bytes=_vmem_limit_bytes(),
            ),
        )(*args)

    try:
        out = _call(True)
    except Exception:
        # jax/lowering without BlockSpec pipeline_mode support: fall back to
        # default double-buffered weight blocks (correctness unchanged).
        out = _call(False)

    if b_pad != B:
        out = out[:B]
    if n_pad != n_out:
        out = out[..., :n_out]
    return out


# ---------------------------------------------------------------------------
# Pure-JAX reference and parameter construction (for the self-test).
# ---------------------------------------------------------------------------
def linear_res_reference(x, params):
    n_in = x.shape[-1]
    n_out = params["w1"].shape[1]

    def ln(y, g, b):
        mu = jnp.mean(y, axis=(-2, -1), keepdims=True)
        var = jnp.mean((y - mu) ** 2, axis=(-2, -1), keepdims=True)
        return (y - mu) / jnp.sqrt(var + EPS) * g + b

    out = x @ params["w1"]
    out = jax.nn.relu(ln(out, params["g1"], params["b1"]))
    out = out @ params["w2"]
    out = ln(out, params["g2"], params["b2"])
    if n_in != n_out:
        out = out + ln(x @ params["wt"], params["gt"], params["bt"])
    else:
        out = out + x
    return jax.nn.relu(out)


def make_params(key, n_in, n_out, n_l):
    ks = jax.random.split(key, 8)
    p = {
        # Linear weights stored transposed, shape (in, out), so the kernel
        # computes x @ W (equivalent to PyTorch x @ weight.T).
        "w1": jax.random.normal(ks[0], (n_in, n_out), jnp.float32) * 0.1,
        "w2": jax.random.normal(ks[1], (n_out, n_out), jnp.float32) * 0.1,
        "g1": 1.0 + 0.1 * jax.random.normal(ks[2], (n_l, n_out), jnp.float32),
        "b1": 0.1 * jax.random.normal(ks[3], (n_l, n_out), jnp.float32),
        "g2": 1.0 + 0.1 * jax.random.normal(ks[4], (n_l, n_out), jnp.float32),
        "b2": 0.1 * jax.random.normal(ks[5], (n_l, n_out), jnp.float32),
    }
    if n_in != n_out:
        p["wt"] = jax.random.normal(ks[6], (n_in, n_out), jnp.float32) * 0.1
        p["gt"] = 1.0 + 0.1 * jax.random.normal(ks[7], (n_l, n_out), jnp.float32)
        p["bt"] = jnp.zeros((n_l, n_out), jnp.float32)
    return p


if __name__ == "__main__":
    key = jax.random.PRNGKey(0)
    n_l = 8

    # Case 1: n_in != n_out -> transform (Linear + LayerNorm) skip path.
    B, n_in, n_out = 2, 16, 32
    k_x, k_p, key = jax.random.split(key, 3)
    x = jax.random.normal(k_x, (B, n_l, n_in), jnp.float32)
    params = make_params(k_p, n_in, n_out, n_l)
    ref = linear_res_reference(x, params)

    # f32 MXU operands -> tight check of kernel math (LN two-pass + lane-pad
    # correction, fused [w1|wt], residual, >=2 grid steps for B=2).
    prep32 = prepare_params(params, mxu_dtype=jnp.float32)
    out32 = jax.block_until_ready(linear_res_forward(x, prep32))
    assert out32.shape == (B, n_l, n_out)
    assert jnp.allclose(out32, ref, atol=1e-4, rtol=1e-4), "transform f32 mismatch"

    # Default bf16 MXU operands (fast path on every generation); f32 accumulate
    # and f32 LN/relu, so only matmul-input rounding differs -> loose tolerance.
    prep16 = prepare_params(params)
    out16 = jax.block_until_ready(linear_res_forward(x, prep16))
    assert out16.shape == (B, n_l, n_out)
    assert jnp.max(jnp.abs(out16 - ref)) < 1e-1, "transform bf16 mismatch"

    # Case 2: n_in == n_out -> identity skip path; B=5 with tb=2 exercises the
    # no-padding divisor fallback (tb -> 1) and a grid extent > 1.
    B2, n2 = 5, 32
    k_x2, k_p2, key = jax.random.split(key, 3)
    x2 = jax.random.normal(k_x2, (B2, n_l, n2), jnp.float32)
    params2 = make_params(k_p2, n2, n2, n_l)
    ref2 = linear_res_reference(x2, params2)

    prep2_32 = prepare_params(params2, mxu_dtype=jnp.float32)
    out2 = jax.block_until_ready(linear_res_forward(x2, prep2_32, tb=2))
    assert out2.shape == (B2, n_l, n2)
    assert jnp.allclose(out2, ref2, atol=1e-4, rtol=1e-4), "identity f32 mismatch"

    prep2_16 = prepare_params(params2)
    out2b = jax.block_until_ready(linear_res_forward(x2, prep2_16))
    assert jnp.max(jnp.abs(out2b - ref2)) < 1e-1, "identity bf16 mismatch"

    print("KERNEL_OK")
</pallas_src>

<mosaic_0001>
module attributes {stable_mosaic.version = 11 : i64} {
  func.func @_linear_res_kernel_transform(%arg0: i32, %arg1: memref<8x16xf32, #tpu.memory_space<vmem>>, %arg2: memref<16x256xf32, #tpu.memory_space<vmem>>, %arg3: memref<128x128xf32, #tpu.memory_space<vmem>>, %arg4: memref<8x128xf32, #tpu.memory_space<vmem>>, %arg5: memref<8x128xf32, #tpu.memory_space<vmem>>, %arg6: memref<8x128xf32, #tpu.memory_space<vmem>>, %arg7: memref<8x128xf32, #tpu.memory_space<vmem>>, %arg8: memref<8x128xf32, #tpu.memory_space<vmem>>, %arg9: memref<8x128xf32, #tpu.memory_space<vmem>>, %arg10: memref<1x8x128xf32, #tpu.memory_space<vmem>>) attributes {dimension_semantics = [#tpu.dimension_semantics<parallel>], iteration_bounds = array<i64: 2>, scalar_prefetch = 0 : i64, scratch_operands = 0 : i64, tpu.core_type = #tpu.core_type<tc>, window_params = [{transform_indices = @transform_0, window_bounds = array<i64: 8, 16>}, {pipeline_mode = #tpu.pipeline_mode<synchronous>, transform_indices = @transform_1, window_bounds = array<i64: 16, 256>}, {pipeline_mode = #tpu.pipeline_mode<synchronous>, transform_indices = @transform_2, window_bounds = array<i64: 128, 128>}, {pipeline_mode = #tpu.pipeline_mode<synchronous>, transform_indices = @transform_3, window_bounds = array<i64: 8, 128>}, {pipeline_mode = #tpu.pipeline_mode<synchronous>, transform_indices = @transform_4, window_bounds = array<i64: 8, 128>}, {pipeline_mode = #tpu.pipeline_mode<synchronous>, transform_indices = @transform_5, window_bounds = array<i64: 8, 128>}, {pipeline_mode = #tpu.pipeline_mode<synchronous>, transform_indices = @transform_6, window_bounds = array<i64: 8, 128>}, {pipeline_mode = #tpu.pipeline_mode<synchronous>, transform_indices = @transform_7, window_bounds = array<i64: 8, 128>}, {pipeline_mode = #tpu.pipeline_mode<synchronous>, transform_indices = @transform_8, window_bounds = array<i64: 8, 128>}, {transform_indices = @transform_9, window_bounds = array<i64: 1, 8, 128>}]} {
    %c0 = arith.constant 0 : index
    %c0_0 = arith.constant 0 : index
    %0 = vector.load %arg1[%c0, %c0_0] : memref<8x16xf32, #tpu.memory_space<vmem>>, vector<8x16xf32>
    %c0_1 = arith.constant 0 : index
    %c0_2 = arith.constant 0 : index
    %1 = vector.load %arg2[%c0_1, %c0_2] : memref<16x256xf32, #tpu.memory_space<vmem>>, vector<16x256xf32>
    %cst = arith.constant dense<0.000000e+00> : vector<8x256xf32>
    %2 = tpu.matmul %0, %1, %cst {dimension_numbers = #tpu.dot_dimension_numbers<[1], [0], [0], [1], [0, 0, 1, 1], [], []>} : vector<8x16xf32>, vector<16x256xf32>, vector<8x256xf32> -> vector<8x256xf32>
    %3 = vector.extract_strided_slice %2 {offsets = [0, 0], sizes = [8, 128], strides = [1, 1]} : vector<8x256xf32> to vector<8x128xf32>
    %4 = vector.shape_cast %3 : vector<8x128xf32> to vector<1x8x128xf32>
    %5 = vector.extract_strided_slice %2 {offsets = [0, 128], sizes = [8, 128], strides = [1, 1]} : vector<8x256xf32> to vector<8x128xf32>
    %6 = vector.shape_cast %5 : vector<8x128xf32> to vector<1x8x128xf32>
    %c0_3 = arith.constant 0 : index
    %c0_4 = arith.constant 0 : index
    %7 = vector.load %arg4[%c0_3, %c0_4] : memref<8x128xf32, #tpu.memory_space<vmem>>, vector<8x128xf32>
    %c0_5 = arith.constant 0 : index
    %c0_6 = arith.constant 0 : index
    %8 = vector.load %arg5[%c0_5, %c0_6] : memref<8x128xf32, #tpu.memory_space<vmem>>, vector<8x128xf32>
    %cst_7 = arith.constant dense<0.000000e+00> : vector<1xf32>
    %9 = vector.multi_reduction <add>, %4, %cst_7 [1, 2] : vector<1x8x128xf32> to vector<1xf32>
    %10 = vector.shape_cast %9 : vector<1xf32> to vector<1x1x1xf32>
    %cst_8 = arith.constant 3.906250e-03 : f32
    %11 = vector.broadcast %cst_8 : f32 to vector<1x1x1xf32>
    %12 = arith.mulf %10, %11 : vector<1x1x1xf32>
    %13 = vector.broadcast %12 : vector<1x1x1xf32> to vector<1x8x128xf32>
    %14 = arith.subf %4, %13 : vector<1x8x128xf32>
    %15 = arith.mulf %14, %14 : vector<1x8x128xf32>
    %cst_9 = arith.constant dense<0.000000e+00> : vector<1xf32>
    %16 = vector.multi_reduction <add>, %15, %cst_9 [1, 2] : vector<1x8x128xf32> to vector<1xf32>
    %17 = vector.shape_cast %16 : vector<1xf32> to vector<1x1x1xf32>
    %cst_10 = arith.constant 3.906250e-03 : f32
    %18 = vector.broadcast %cst_10 : f32 to vector<1x1x1xf32>
    %19 = arith.mulf %17, %18 : vector<1x1x1xf32>
    %20 = arith.mulf %12, %12 : vector<1x1x1xf32>
    %cst_11 = arith.constant 3.000000e+00 : f32
    %21 = vector.broadcast %cst_11 : f32 to vector<1x1x1xf32>
    %22 = arith.mulf %21, %20 : vector<1x1x1xf32>
    %23 = arith.subf %19, %22 : vector<1x1x1xf32>
    %cst_12 = arith.constant 0.000000e+00 : f32
    %24 = vector.broadcast %cst_12 : f32 to vector<1x1x1xf32>
    %25 = arith.maximumf %23, %24 : vector<1x1x1xf32>
    %cst_13 = arith.constant 9.99999974E-6 : f32
    %26 = vector.broadcast %cst_13 : f32 to vector<1x1x1xf32>
    %27 = arith.addf %25, %26 : vector<1x1x1xf32>
    %28 = math.rsqrt %27 : vector<1x1x1xf32>
    %29 = vector.broadcast %28 : vector<1x1x1xf32> to vector<1x8x128xf32>
    %30 = arith.mulf %14, %29 : vector<1x8x128xf32>
    %31 = vector.shape_cast %7 : vector<8x128xf32> to vector<1x8x128xf32>
    %32 = arith.mulf %30, %31 : vector<1x8x128xf32>
    %33 = vector.shape_cast %8 : vector<8x128xf32> to vector<1x8x128xf32>
    %34 = arith.addf %32, %33 : vector<1x8x128xf32>
    %cst_14 = arith.constant 0.000000e+00 : f32
    %35 = vector.broadcast %cst_14 : f32 to vector<1x8x128xf32>
    %36 = arith.maximumf %34, %35 : vector<1x8x128xf32>
    %37 = vector.shape_cast %36 : vector<1x8x128xf32> to vector<8x128xf32>
    %c0_15 = arith.constant 0 : index
    %c0_16 = arith.constant 0 : index
    %38 = vector.load %arg3[%c0_15, %c0_16] : memref<128x128xf32, #tpu.memory_space<vmem>>, vector<128x128xf32>
    %cst_17 = arith.constant dense<0.000000e+00> : vector<8x128xf32>
    %39 = tpu.matmul %37, %38, %cst_17 {dimension_numbers = #tpu.dot_dimension_numbers<[1], [0], [0], [1], [0, 0, 1, 1], [], []>} : vector<8x128xf32>, vector<128x128xf32>, vector<8x128xf32> -> vector<8x128xf32>
    %40 = vector.shape_cast %39 : vector<8x128xf32> to vector<1x8x128xf32>
    %c0_18 = arith.constant 0 : index
    %c0_19 = arith.constant 0 : index
    %41 = vector.load %arg6[%c0_18, %c0_19] : memref<8x128xf32, #tpu.memory_space<vmem>>, vector<8x128xf32>
    %c0_20 = arith.constant 0 : index
    %c0_21 = arith.constant 0 : index
    %42 = vector.load %arg7[%c0_20, %c0_21] : memref<8x128xf32, #tpu.memory_space<vmem>>, vector<8x128xf32>
    %cst_22 = arith.constant dense<0.000000e+00> : vector<1xf32>
    %43 = vector.multi_reduction <add>, %40, %cst_22 [1, 2] : vector<1x8x128xf32> to vector<1xf32>
    %44 = vector.shape_cast %43 : vector<1xf32> to vector<1x1x1xf32>
    %cst_23 = arith.constant 3.906250e-03 : f32
    %45 = vector.broadcast %cst_23 : f32 to vector<1x1x1xf32>
    %46 = arith.mulf %44, %45 : vector<1x1x1xf32>
    %47 = vector.broadcast %46 : vector<1x1x1xf32> to vector<1x8x128xf32>
    %48 = arith.subf %40, %47 : vector<1x8x128xf32>
    %49 = arith.mulf %48, %48 : vector<1x8x128xf32>
    %cst_24 = arith.constant dense<0.000000e+00> : vector<1xf32>
    %50 = vector.multi_reduction <add>, %49, %cst_24 [1, 2] : vector<1x8x128xf32> to vector<1xf32>
    %51 = vector.shape_cast %50 : vector<1xf32> to vector<1x1x1xf32>
    %cst_25 = arith.constant 3.906250e-03 : f32
    %52 = vector.broadcast %cst_25 : f32 to vector<1x1x1xf32>
    %53 = arith.mulf %51, %52 : vector<1x1x1xf32>
    %54 = arith.mulf %46, %46 : vector<1x1x1xf32>
    %cst_26 = arith.constant 3.000000e+00 : f32
    %55 = vector.broadcast %cst_26 : f32 to vector<1x1x1xf32>
    %56 = arith.mulf %55, %54 : vector<1x1x1xf32>
    %57 = arith.subf %53, %56 : vector<1x1x1xf32>
    %cst_27 = arith.constant 0.000000e+00 : f32
    %58 = vector.broadcast %cst_27 : f32 to vector<1x1x1xf32>
    %59 = arith.maximumf %57, %58 : vector<1x1x1xf32>
    %cst_28 = arith.constant 9.99999974E-6 : f32
    %60 = vector.broadcast %cst_28 : f32 to vector<1x1x1xf32>
    %61 = arith.addf %59, %60 : vector<1x1x1xf32>
    %62 = math.rsqrt %61 : vector<1x1x1xf32>
    %63 = vector.broadcast %62 : vector<1x1x1xf32> to vector<1x8x128xf32>
    %64 = arith.mulf %48, %63 : vector<1x8x128xf32>
    %65 = vector.shape_cast %41 : vector<8x128xf32> to vector<1x8x128xf32>
    %66 = arith.mulf %64, %65 : vector<1x8x128xf32>
    %67 = vector.shape_cast %42 : vector<8x128xf32> to vector<1x8x128xf32>
    %68 = arith.addf %66, %67 : vector<1x8x128xf32>
    %c0_29 = arith.constant 0 : index
    %c0_30 = arith.constant 0 : index
    %69 = vector.load %arg8[%c0_29, %c0_30] : memref<8x128xf32, #tpu.memory_space<vmem>>, vector<8x128xf32>
    %c0_31 = arith.constant 0 : index
    %c0_32 = arith.constant 0 : index
    %70 = vector.load %arg9[%c0_31, %c0_32] : memref<8x128xf32, #tpu.memory_space<vmem>>, vector<8x128xf32>
    %cst_33 = arith.constant dense<0.000000e+00> : vector<1xf32>
    %71 = vector.multi_reduction <add>, %6, %cst_33 [1, 2] : vector<1x8x128xf32> to vector<1xf32>
    %72 = vector.shape_cast %71 : vector<1xf32> to vector<1x1x1xf32>
    %cst_34 = arith.constant 3.906250e-03 : f32
    %73 = vector.broadcast %cst_34 : f32 to vector<1x1x1xf32>
    %74 = arith.mulf %72, %73 : vector<1x1x1xf32>
    %75 = vector.broadcast %74 : vector<1x1x1xf32> to vector<1x8x128xf32>
    %76 = arith.subf %6, %75 : vector<1x8x128xf32>
    %77 = arith.mulf %76, %76 : vector<1x8x128xf32>
    %cst_35 = arith.constant dense<0.000000e+00> : vector<1xf32>
    %78 = vector.multi_reduction <add>, %77, %cst_35 [1, 2] : vector<1x8x128xf32> to vector<1xf32>
    %79 = vector.shape_cast %78 : vector<1xf32> to vector<1x1x1xf32>
    %cst_36 = arith.constant 3.906250e-03 : f32
    %80 = vector.broadcast %cst_36 : f32 to vector<1x1x1xf32>
    %81 = arith.mulf %79, %80 : vector<1x1x1xf32>
    %82 = arith.mulf %74, %74 : vector<1x1x1xf32>
    %cst_37 = arith.constant 3.000000e+00 : f32
    %83 = vector.broadcast %cst_37 : f32 to vector<1x1x1xf32>
    %84 = arith.mulf %83, %82 : vector<1x1x1xf32>
    %85 = arith.subf %81, %84 : vector<1x1x1xf32>
    %cst_38 = arith.constant 0.000000e+00 : f32
    %86 = vector.broadcast %cst_38 : f32 to vector<1x1x1xf32>
    %87 = arith.maximumf %85, %86 : vector<1x1x1xf32>
    %cst_39 = arith.constant 9.99999974E-6 : f32
    %88 = vector.broadcast %cst_39 : f32 to vector<1x1x1xf32>
    %89 = arith.addf %87, %88 : vector<1x1x1xf32>
    %90 = math.rsqrt %89 : vector<1x1x1xf32>
    %91 = vector.broadcast %90 : vector<1x1x1xf32> to vector<1x8x128xf32>
    %92 = arith.mulf %76, %91 : vector<1x8x128xf32>
    %93 = vector.shape_cast %69 : vector<8x128xf32> to vector<1x8x128xf32>
    %94 = arith.mulf %92, %93 : vector<1x8x128xf32>
    %95 = vector.shape_cast %70 : vector<8x128xf32> to vector<1x8x128xf32>
    %96 = arith.addf %94, %95 : vector<1x8x128xf32>
    %97 = arith.addf %68, %96 : vector<1x8x128xf32>
    %cst_40 = arith.constant 0.000000e+00 : f32
    %98 = vector.broadcast %cst_40 : f32 to vector<1x8x128xf32>
    %99 = arith.maximumf %97, %98 : vector<1x8x128xf32>
    %c0_41 = arith.constant 0 : index
    %c0_42 = arith.constant 0 : index
    %c0_43 = arith.constant 0 : index
    %100 = vector.load %arg10[%c0_41, %c0_42, %c0_43] : memref<1x8x128xf32, #tpu.memory_space<vmem>>, vector<1x8x128xf32>
    tpu.vector_store %arg10[%c0_41, %c0_42, %c0_43], %99 {strides = array<i32>} : memref<1x8x128xf32, #tpu.memory_space<vmem>>, vector<1x8x128xf32>,
    return
  }
  func.func @transform_0(%arg0: i32) -> (i32, i32) {
    %c0_i32 = arith.constant 0 : i32
    %c0_i32_0 = arith.constant 0 : i32
    return %arg0, %c0_i32 : i32, i32
  }
  func.func @transform_1(%arg0: i32) -> (i32, i32) {
    %c0_i32 = arith.constant 0 : i32
    %c0_i32_0 = arith.constant 0 : i32
    %c0_i32_1 = arith.constant 0 : i32
    return %c0_i32, %c0_i32_0 : i32, i32
  }
  func.func @transform_2(%arg0: i32) -> (i32, i32) {
    %c0_i32 = arith.constant 0 : i32
    %c0_i32_0 = arith.constant 0 : i32
    %c0_i32_1 = arith.constant 0 : i32
    return %c0_i32, %c0_i32_0 : i32, i32
  }
  func.func @transform_3(%arg0: i32) -> (i32, i32) {
    %c0_i32 = arith.constant 0 : i32
    %c0_i32_0 = arith.constant 0 : i32
    %c0_i32_1 = arith.constant 0 : i32
    return %c0_i32, %c0_i32_0 : i32, i32
  }
  func.func @transform_4(%arg0: i32) -> (i32, i32) {
    %c0_i32 = arith.constant 0 : i32
    %c0_i32_0 = arith.constant 0 : i32
    %c0_i32_1 = arith.constant 0 : i32
    return %c0_i32, %c0_i32_0 : i32, i32
  }
  func.func @transform_5(%arg0: i32) -> (i32, i32) {
    %c0_i32 = arith.constant 0 : i32
    %c0_i32_0 = arith.constant 0 : i32
    %c0_i32_1 = arith.constant 0 : i32
    return %c0_i32, %c0_i32_0 : i32, i32
  }
  func.func @transform_6(%arg0: i32) -> (i32, i32) {
    %c0_i32 = arith.constant 0 : i32
    %c0_i32_0 = arith.constant 0 : i32
    %c0_i32_1 = arith.constant 0 : i32
    return %c0_i32, %c0_i32_0 : i32, i32
  }
  func.func @transform_7(%arg0: i32) -> (i32, i32) {
    %c0_i32 = arith.constant 0 : i32
    %c0_i32_0 = arith.constant 0 : i32
    %c0_i32_1 = arith.constant 0 : i32
    return %c0_i32, %c0_i32_0 : i32, i32
  }
  func.func @transform_8(%arg0: i32) -> (i32, i32) {
    %c0_i32 = arith.constant 0 : i32
    %c0_i32_0 = arith.constant 0 : i32
    %c0_i32_1 = arith.constant 0 : i32
    return %c0_i32, %c0_i32_0 : i32, i32
  }
  func.func @transform_9(%arg0: i32) -> (i32, i32, i32) {
    %c0_i32 = arith.constant 0 : i32
    %c0_i32_0 = arith.constant 0 : i32
    %c0_i32_1 = arith.constant 0 : i32
    return %arg0, %c0_i32, %c0_i32_0 : i32, i32, i32
  }
}

module attributes {stable_mosaic.version = 11 : i64} {
  func.func @_linear_res_kernel_transform(%arg0: i32, %arg1: memref<8x16xf32, #tpu.memory_space<vmem>>, %arg2: memref<16x256xf32, #tpu.memory_space<vmem>>, %arg3: memref<128x128xf32, #tpu.memory_space<vmem>>, %arg4: memref<8x128xf32, #tpu.memory_space<vmem>>, %arg5: memref<8x128xf32, #tpu.memory_space<vmem>>, %arg6: memref<8x128xf32, #tpu.memory_space<vmem>>, %arg7: memref<8x128xf32, #tpu.memory_space<vmem>>, %arg8: memref<8x128xf32, #tpu.memory_space<vmem>>, %arg9: memref<8x128xf32, #tpu.memory_space<vmem>>, %arg10: memref<1x8x128xf32, #tpu.memory_space<vmem>>) attributes {dimension_semantics = [#tpu.dimension_semantics<parallel>], iteration_bounds = array<i64: 2>, scalar_prefetch = 0 : i64, scratch_operands = 0 : i64, tpu.core_type = #tpu.core_type<tc>, window_params = [{transform_indices = @transform_0, window_bounds = array<i64: 8, 16>}, {pipeline_mode = #tpu.pipeline_mode<synchronous>, transform_indices = @transform_1, window_bounds = array<i64: 16, 256>}, {pipeline_mode = #tpu.pipeline_mode<synchronous>, transform_indices = @transform_2, window_bounds = array<i64: 128, 128>}, {pipeline_mode = #tpu.pipeline_mode<synchronous>, transform_indices = @transform_3, window_bounds = array<i64: 8, 128>}, {pipeline_mode = #tpu.pipeline_mode<synchronous>, transform_indices = @transform_4, window_bounds = array<i64: 8, 128>}, {pipeline_mode = #tpu.pipeline_mode<synchronous>, transform_indices = @transform_5, window_bounds = array<i64: 8, 128>}, {pipeline_mode = #tpu.pipeline_mode<synchronous>, transform_indices = @transform_6, window_bounds = array<i64: 8, 128>}, {pipeline_mode = #tpu.pipeline_mode<synchronous>, transform_indices = @transform_7, window_bounds = array<i64: 8, 128>}, {pipeline_mode = #tpu.pipeline_mode<synchronous>, transform_indices = @transform_8, window_bounds = array<i64: 8, 128>}, {transform_indices = @transform_9, window_bounds = array<i64: 1, 8, 128>}]} {
    %c0 = arith.constant 0 : index
    %c0_0 = arith.constant 0 : index
    %0 = vector.load %arg1[%c0, %c0_0] : memref<8x16xf32, #tpu.memory_space<vmem>>, vector<8x16xf32>
    %c0_1 = arith.constant 0 : index
    %c0_2 = arith.constant 0 : index
    %1 = vector.load %arg2[%c0_1, %c0_2] : memref<16x256xf32, #tpu.memory_space<vmem>>, vector<16x256xf32>
    %cst = arith.constant dense<0.000000e+00> : vector<8x256xf32>
    %2 = tpu.matmul %0, %1, %cst {dimension_numbers = #tpu.dot_dimension_numbers<[1], [0], [0], [1], [0, 0, 1, 1], [], []>} : vector<8x16xf32>, vector<16x256xf32>, vector<8x256xf32> -> vector<8x256xf32>
    %3 = vector.extract_strided_slice %2 {offsets = [0, 0], sizes = [8, 128], strides = [1, 1]} : vector<8x256xf32> to vector<8x128xf32>
    %4 = vector.shape_cast %3 : vector<8x128xf32> to vector<1x8x128xf32>
    %5 = vector.extract_strided_slice %2 {offsets = [0, 128], sizes = [8, 128], strides = [1, 1]} : vector<8x256xf32> to vector<8x128xf32>
    %6 = vector.shape_cast %5 : vector<8x128xf32> to vector<1x8x128xf32>
    %c0_3 = arith.constant 0 : index
    %c0_4 = arith.constant 0 : index
    %7 = vector.load %arg4[%c0_3, %c0_4] : memref<8x128xf32, #tpu.memory_space<vmem>>, vector<8x128xf32>
    %c0_5 = arith.constant 0 : index
    %c0_6 = arith.constant 0 : index
    %8 = vector.load %arg5[%c0_5, %c0_6] : memref<8x128xf32, #tpu.memory_space<vmem>>, vector<8x128xf32>
    %cst_7 = arith.constant dense<0.000000e+00> : vector<1xf32>
    %9 = vector.multi_reduction <add>, %4, %cst_7 [1, 2] : vector<1x8x128xf32> to vector<1xf32>
    %10 = vector.shape_cast %9 : vector<1xf32> to vector<1x1x1xf32>
    %cst_8 = arith.constant 3.906250e-03 : f32
    %11 = vector.broadcast %cst_8 : f32 to vector<1x1x1xf32>
    %12 = arith.mulf %10, %11 : vector<1x1x1xf32>
    %13 = vector.broadcast %12 : vector<1x1x1xf32> to vector<1x8x128xf32>
    %14 = arith.subf %4, %13 : vector<1x8x128xf32>
    %15 = arith.mulf %14, %14 : vector<1x8x128xf32>
    %cst_9 = arith.constant dense<0.000000e+00> : vector<1xf32>
    %16 = vector.multi_reduction <add>, %15, %cst_9 [1, 2] : vector<1x8x128xf32> to vector<1xf32>
    %17 = vector.shape_cast %16 : vector<1xf32> to vector<1x1x1xf32>
    %cst_10 = arith.constant 3.906250e-03 : f32
    %18 = vector.broadcast %cst_10 : f32 to vector<1x1x1xf32>
    %19 = arith.mulf %17, %18 : vector<1x1x1xf32>
    %20 = arith.mulf %12, %12 : vector<1x1x1xf32>
    %cst_11 = arith.constant 3.000000e+00 : f32
    %21 = vector.broadcast %cst_11 : f32 to vector<1x1x1xf32>
    %22 = arith.mulf %21, %20 : vector<1x1x1xf32>
    %23 = arith.subf %19, %22 : vector<1x1x1xf32>
    %cst_12 = arith.constant 0.000000e+00 : f32
    %24 = vector.broadcast %cst_12 : f32 to vector<1x1x1xf32>
    %25 = arith.maximumf %23, %24 : vector<1x1x1xf32>
    %cst_13 = arith.constant 9.99999974E-6 : f32
    %26 = vector.broadcast %cst_13 : f32 to vector<1x1x1xf32>
    %27 = arith.addf %25, %26 : vector<1x1x1xf32>
    %28 = math.rsqrt %27 : vector<1x1x1xf32>
    %29 = vector.broadcast %28 : vector<1x1x1xf32> to vector<1x8x128xf32>
    %30 = arith.mulf %14, %29 : vector<1x8x128xf32>
    %31 = vector.shape_cast %7 : vector<8x128xf32> to vector<1x8x128xf32>
    %32 = arith.mulf %30, %31 : vector<1x8x128xf32>
    %33 = vector.shape_cast %8 : vector<8x128xf32> to vector<1x8x128xf32>
    %34 = arith.addf %32, %33 : vector<1x8x128xf32>
    %cst_14 = arith.constant 0.000000e+00 : f32
    %35 = vector.broadcast %cst_14 : f32 to vector<1x8x128xf32>
    %36 = arith.maximumf %34, %35 : vector<1x8x128xf32>
    %37 = vector.shape_cast %36 : vector<1x8x128xf32> to vector<8x128xf32>
    %c0_15 = arith.constant 0 : index
    %c0_16 = arith.constant 0 : index
    %38 = vector.load %arg3[%c0_15, %c0_16] : memref<128x128xf32, #tpu.memory_space<vmem>>, vector<128x128xf32>
    %cst_17 = arith.constant dense<0.000000e+00> : vector<8x128xf32>
    %39 = tpu.matmul %37, %38, %cst_17 {dimension_numbers = #tpu.dot_dimension_numbers<[1], [0], [0], [1], [0, 0, 1, 1], [], []>} : vector<8x128xf32>, vector<128x128xf32>, vector<8x128xf32> -> vector<8x128xf32>
    %40 = vector.shape_cast %39 : vector<8x128xf32> to vector<1x8x128xf32>
    %c0_18 = arith.constant 0 : index
    %c0_19 = arith.constant 0 : index
    %41 = vector.load %arg6[%c0_18, %c0_19] : memref<8x128xf32, #tpu.memory_space<vmem>>, vector<8x128xf32>
    %c0_20 = arith.constant 0 : index
    %c0_21 = arith.constant 0 : index
    %42 = vector.load %arg7[%c0_20, %c0_21] : memref<8x128xf32, #tpu.memory_space<vmem>>, vector<8x128xf32>
    %cst_22 = arith.constant dense<0.000000e+00> : vector<1xf32>
    %43 = vector.multi_reduction <add>, %40, %cst_22 [1, 2] : vector<1x8x128xf32> to vector<1xf32>
    %44 = vector.shape_cast %43 : vector<1xf32> to vector<1x1x1xf32>
    %cst_23 = arith.constant 3.906250e-03 : f32
    %45 = vector.broadcast %cst_23 : f32 to vector<1x1x1xf32>
    %46 = arith.mulf %44, %45 : vector<1x1x1xf32>
    %47 = vector.broadcast %46 : vector<1x1x1xf32> to vector<1x8x128xf32>
    %48 = arith.subf %40, %47 : vector<1x8x128xf32>
    %49 = arith.mulf %48, %48 : vector<1x8x128xf32>
    %cst_24 = arith.constant dense<0.000000e+00> : vector<1xf32>
    %50 = vector.multi_reduction <add>, %49, %cst_24 [1, 2] : vector<1x8x128xf32> to vector<1xf32>
    %51 = vector.shape_cast %50 : vector<1xf32> to vector<1x1x1xf32>
    %cst_25 = arith.constant 3.906250e-03 : f32
    %52 = vector.broadcast %cst_25 : f32 to vector<1x1x1xf32>
    %53 = arith.mulf %51, %52 : vector<1x1x1xf32>
    %54 = arith.mulf %46, %46 : vector<1x1x1xf32>
    %cst_26 = arith.constant 3.000000e+00 : f32
    %55 = vector.broadcast %cst_26 : f32 to vector<1x1x1xf32>
    %56 = arith.mulf %55, %54 : vector<1x1x1xf32>
    %57 = arith.subf %53, %56 : vector<1x1x1xf32>
    %cst_27 = arith.constant 0.000000e+00 : f32
    %58 = vector.broadcast %cst_27 : f32 to vector<1x1x1xf32>
    %59 = arith.maximumf %57, %58 : vector<1x1x1xf32>
    %cst_28 = arith.constant 9.99999974E-6 : f32
    %60 = vector.broadcast %cst_28 : f32 to vector<1x1x1xf32>
    %61 = arith.addf %59, %60 : vector<1x1x1xf32>
    %62 = math.rsqrt %61 : vector<1x1x1xf32>
    %63 = vector.broadcast %62 : vector<1x1x1xf32> to vector<1x8x128xf32>
    %64 = arith.mulf %48, %63 : vector<1x8x128xf32>
    %65 = vector.shape_cast %41 : vector<8x128xf32> to vector<1x8x128xf32>
    %66 = arith.mulf %64, %65 : vector<1x8x128xf32>
    %67 = vector.shape_cast %42 : vector<8x128xf32> to vector<1x8x128xf32>
    %68 = arith.addf %66, %67 : vector<1x8x128xf32>
    %c0_29 = arith.constant 0 : index
    %c0_30 = arith.constant 0 : index
    %69 = vector.load %arg8[%c0_29, %c0_30] : memref<8x128xf32, #tpu.memory_space<vmem>>, vector<8x128xf32>
    %c0_31 = arith.constant 0 : index
    %c0_32 = arith.constant 0 : index
    %70 = vector.load %arg9[%c0_31, %c0_32] : memref<8x128xf32, #tpu.memory_space<vmem>>, vector<8x128xf32>
    %cst_33 = arith.constant dense<0.000000e+00> : vector<1xf32>
    %71 = vector.multi_reduction <add>, %6, %cst_33 [1, 2] : vector<1x8x128xf32> to vector<1xf32>
    %72 = vector.shape_cast %71 : vector<1xf32> to vector<1x1x1xf32>
    %cst_34 = arith.constant 3.906250e-03 : f32
    %73 = vector.broadcast %cst_34 : f32 to vector<1x1x1xf32>
    %74 = arith.mulf %72, %73 : vector<1x1x1xf32>
    %75 = vector.broadcast %74 : vector<1x1x1xf32> to vector<1x8x128xf32>
    %76 = arith.subf %6, %75 : vector<1x8x128xf32>
    %77 = arith.mulf %76, %76 : vector<1x8x128xf32>
    %cst_35 = arith.constant dense<0.000000e+00> : vector<1xf32>
    %78 = vector.multi_reduction <add>, %77, %cst_35 [1, 2] : vector<1x8x128xf32> to vector<1xf32>
    %79 = vector.shape_cast %78 : vector<1xf32> to vector<1x1x1xf32>
    %cst_36 = arith.constant 3.906250e-03 : f32
    %80 = vector.broadcast %cst_36 : f32 to vector<1x1x1xf32>
    %81 = arith.mulf %79, %80 : vector<1x1x1xf32>
    %82 = arith.mulf %74, %74 : vector<1x1x1xf32>
    %cst_37 = arith.constant 3.000000e+00 : f32
    %83 = vector.broadcast %cst_37 : f32 to vector<1x1x1xf32>
    %84 = arith.mulf %83, %82 : vector<1x1x1xf32>
    %85 = arith.subf %81, %84 : vector<1x1x1xf32>
    %cst_38 = arith.constant 0.000000e+00 : f32
    %86 = vector.broadcast %cst_38 : f32 to vector<1x1x1xf32>
    %87 = arith.maximumf %85, %86 : vector<1x1x1xf32>
    %cst_39 = arith.constant 9.99999974E-6 : f32
    %88 = vector.broadcast %cst_39 : f32 to vector<1x1x1xf32>
    %89 = arith.addf %87, %88 : vector<1x1x1xf32>
    %90 = math.rsqrt %89 : vector<1x1x1xf32>
    %91 = vector.broadcast %90 : vector<1x1x1xf32> to vector<1x8x128xf32>
    %92 = arith.mulf %76, %91 : vector<1x8x128xf32>
    %93 = vector.shape_cast %69 : vector<8x128xf32> to vector<1x8x128xf32>
    %94 = arith.mulf %92, %93 : vector<1x8x128xf32>
    %95 = vector.shape_cast %70 : vector<8x128xf32> to vector<1x8x128xf32>
    %96 = arith.addf %94, %95 : vector<1x8x128xf32>
    %97 = arith.addf %68, %96 : vector<1x8x128xf32>
    %cst_40 = arith.constant 0.000000e+00 : f32
    %98 = vector.broadcast %cst_40 : f32 to vector<1x8x128xf32>
    %99 = arith.maximumf %97, %98 : vector<1x8x128xf32>
    %c0_41 = arith.constant 0 : index
    %c0_42 = arith.constant 0 : index
    %c0_43 = arith.constant 0 : index
    %100 = vector.load %arg10[%c0_41, %c0_42, %c0_43] : memref<1x8x128xf32, #tpu.memory_space<vmem>>, vector<1x8x128xf32>
    tpu.vector_store %arg10[%c0_41, %c0_42, %c0_43], %99 {strides = array<i32>} : memref<1x8x128xf32, #tpu.memory_space<vmem>>, vector<1x8x128xf32>,
    return
  }
  func.func @transform_0(%arg0: i32) -> (i32, i32) {
    %c0_i32 = arith.constant 0 : i32
    %c0_i32_0 = arith.constant 0 : i32
    return %arg0, %c0_i32 : i32, i32
  }
  func.func @transform_1(%arg0: i32) -> (i32, i32) {
    %c0_i32 = arith.constant 0 : i32
    %c0_i32_0 = arith.constant 0 : i32
    %c0_i32_1 = arith.constant 0 : i32
    return %c0_i32, %c0_i32_0 : i32, i32
  }
  func.func @transform_2(%arg0: i32) -> (i32, i32) {
    %c0_i32 = arith.constant 0 : i32
    %c0_i32_0 = arith.constant 0 : i32
    %c0_i32_1 = arith.constant 0 : i32
    return %c0_i32, %c0_i32_0 : i32, i32
  }
  func.func @transform_3(%arg0: i32) -> (i32, i32) {
    %c0_i32 = arith.constant 0 : i32
    %c0_i32_0 = arith.constant 0 : i32
    %c0_i32_1 = arith.constant 0 : i32
    return %c0_i32, %c0_i32_0 : i32, i32
  }
  func.func @transform_4(%arg0: i32) -> (i32, i32) {
    %c0_i32 = arith.constant 0 : i32
    %c0_i32_0 = arith.constant 0 : i32
    %c0_i32_1 = arith.constant 0 : i32
    return %c0_i32, %c0_i32_0 : i32, i32
  }
  func.func @transform_5(%arg0: i32) -> (i32, i32) {
    %c0_i32 = arith.constant 0 : i32
    %c0_i32_0 = arith.constant 0 : i32
    %c0_i32_1 = arith.constant 0 : i32
    return %c0_i32, %c0_i32_0 : i32, i32
  }
  func.func @transform_6(%arg0: i32) -> (i32, i32) {
    %c0_i32 = arith.constant 0 : i32
    %c0_i32_0 = arith.constant 0 : i32
    %c0_i32_1 = arith.constant 0 : i32
    return %c0_i32, %c0_i32_0 : i32, i32
  }
  func.func @transform_7(%arg0: i32) -> (i32, i32) {
    %c0_i32 = arith.constant 0 : i32
    %c0_i32_0 = arith.constant 0 : i32
    %c0_i32_1 = arith.constant 0 : i32
    return %c0_i32, %c0_i32_0 : i32, i32
  }
  func.func @transform_8(%arg0: i32) -> (i32, i32) {
    %c0_i32 = arith.constant 0 : i32
    %c0_i32_0 = arith.constant 0 : i32
    %c0_i32_1 = arith.constant 0 : i32
    return %c0_i32, %c0_i32_0 : i32, i32
  }
  func.func @transform_9(%arg0: i32) -> (i32, i32, i32) {
    %c0_i32 = arith.constant 0 : i32
    %c0_i32_0 = arith.constant 0 : i32
    %c0_i32_1 = arith.constant 0 : i32
    return %arg0, %c0_i32, %c0_i32_0 : i32, i32, i32
  }
}

</mosaic_0001>

<bundles_post_ra>
// kernel: tpu_custom_call.1
= control target key start
LH: loop header
LB: loop body
LE: loop exit
PB: predicated region body
PF: predicated region fallthrough
CT: control target
= control target key end

     0   :  { %s1634_s0 = inlined_call_operand.hbm [shape: f32[16,16], index: 0, kind: input, shape index: {}]   ;;  %s1635_s1 = inlined_call_operand.hbm [shape: f32[16,256], index: 1, kind: input, shape index: {}]   ;;  %s1636_s2 = inlined_call_operand.hbm [shape: f32[128,128], index: 2, kind: input, shape index: {}]   ;;  %s1637_s3 = inlined_call_operand.hbm [shape: f32[8,128], index: 3, kind: input, shape index: {}]   ;;  %s1638_s4 = inlined_call_operand.hbm [shape: f32[8,128], index: 4, kind: input, shape index: {}]   ;;  %s1639_s5 = inlined_call_operand.hbm [shape: f32[8,128], index: 5, kind: input, shape index: {}]   ;;  %s1640_s6 = inlined_call_operand.hbm [shape: f32[8,128], index: 6, kind: input, shape index: {}]   ;;  %s1641_s7 = inlined_call_operand.hbm [shape: f32[8,128], index: 7, kind: input, shape index: {}]   ;;  %s1642_s8 = inlined_call_operand.hbm [shape: f32[8,128], index: 8, kind: input, shape index: {}]   ;;  %s1643_s9 = inlined_call_operand.hbm [shape: f32[2,8,128], index: 9, kind: output, shape index: {}]  }
   0x1   :  { %1644 = sst [smem:[#allocation24_spill]] %s1635_s1 }
   0x2   :  { %1645 = sst [smem:[#allocation25_spill]] %s1636_s2 }
   0x3   :  { %1646 = sst [smem:[#allocation26_spill]] %s1637_s3 }
   0x4   :  { %1647 = sst [smem:[#allocation27_spill]] %s1638_s4 }
   0x5   :  { %14 = vsyncpa [#allocation3], 0 }
   0x6   :  { %16 = vsyncpa [#allocation3 + $0x1], 0 }
   0x7   :  { %17 = vsyncpa [#allocation6], 0 }
   0x8   :  { %18 = vsyncpa [#allocation9], 0 }
   0x9   :  { %19 = vsyncpa [#allocation12], 0 }
   0xa   :  { %20 = vsyncpa [#allocation15], 0 }
   0xb   :  { %21 = vsyncpa [#allocation4], 0 }
   0xc   :  { %23 = vsyncpa [#allocation4 + $0x1], 0  ;;  %s1424_s30 = smov 0   ;;  %s1426_s10 = smov 0  }
   0xd   :  { %s1428_s11 = smov 0   ;;  %s1430_s12 = smov 0  }
   0xe LB: > { %s1648_s1 = sld [smem:[#allocation24_spill]]  ;;  %s1448_s16 = sadd.s32 4294967295, %s1360_s12   ;;  %s1360_s12 = sphi %s1430_s12, %s1663_s12   ;;  %s1356_s11 = sphi %s1428_s11, %s1662_s11   ;;  %s1352_s10 = sphi %s1426_s10, %s1661_s10   ;;  %s1348_s30 = sphi %s1424_s30, %s1660_s30  }
   0xf   : > { %p842_p0 = scmp.ge.s32.totalorder %s1360_s12, 1  ;;  %p50_p1 = scmp.eq.s32.totalorder %s1448_s16, 0 }
  0x10   : > { %p254_p2 = scmp.lt.s32.totalorder %s1360_s12, 3  ;;  %s1362_s18 = smov [#allocation5]  }
  0x11   : > { %s267_s19 = sshll.u32 %s1362_s18, 4  ;;  %s1650_s3 = sld [smem:[#allocation26_spill]]  ;;  %s268_s19 = int_to_ptr.vmem [resolvable:$true] %s267_s19 }
  0x12   : > { %p1453_p3 = pnand %p842_p0, %p254_p2  ;;  %s318_s26 = sshll.u32 %s1639_s5, 4  ;;  %s319_s26 = int_to_ptr.hbm [resolvable:$true] %s318_s26 }
  0x13   : > { %s1363_s27 = smov [#allocation8]   ;;  %s1364_s29 = smov 256  }
  0x14   : > { %s265_s15 = sshll.u32 %s1648_s1, 4  ;;  %p907_p4 = pneg %p1453_p3  ;;  %s266_s15 = int_to_ptr.hbm [resolvable:$true] %s265_s15 }
  0x15   : > { %s296_s28 = sshll.u32 %s1363_s27, 4  ;;  %s1365_s13 = smov 16   ;;  %s297_s28 = int_to_ptr.vmem [resolvable:$true] %s296_s28 }
  0x16   : > { %p1465_p6 = pnand %p907_p4, %p50_p1  ;;  %s342_s20 = sshll.u32 %s1641_s7, 4  ;;  %s343_s20 = int_to_ptr.hbm [resolvable:$true] %s342_s20 }
  0x17   : > { %s294_s22 = sshll.u32 %s1650_s3, 4  ;;  %s1366_s21 = smov [#allocation11]   ;;  %s295_s22 = int_to_ptr.hbm [resolvable:$true] %s294_s22 }
  0x18   : > { %910 = dma.hbm_to_vmem [thread:$0]  (!%p1465_p6), %s266_s15, 512, %s268_s19, [#allocation6], %s1364_s29, %s1364_s29, %s1365_s13  }
  0x19   : > { %916 = dma.hbm_to_vmem [thread:$0]  (!%p1465_p6), %s295_s22, 128, %s297_s28, [#allocation9]  }
  0x1a   : > { %s320_s1 = sshll.u32 %s1366_s21, 4  ;;  %s1367_s24 = smov [#allocation14]   ;;  %s321_s1 = int_to_ptr.vmem [resolvable:$true] %s320_s1 }
  0x1b   : > { %922 = dma.hbm_to_vmem [thread:$0]  (!%p1465_p6), %s319_s26, 128, %s321_s1, [#allocation12]  }
  0x1c   : > { %s344_s25 = sshll.u32 %s1367_s24, 4  ;;  %s1652_s2 = sld [smem:[#allocation25_spill]]  ;;  %s345_s25 = int_to_ptr.vmem [resolvable:$true] %s344_s25 }
  0x1d   : > { %928 = dma.hbm_to_vmem [thread:$0]  (!%p1465_p6), %s343_s20, 128, %s345_s25, [#allocation15]  }
  0x1e   : > { %s1368_s19 = smov [#allocation7]   ;;  %s1653_s4 = sld [smem:[#allocation27_spill]] }
  0x1f   : > { %s281_s22 = sshll.u32 %s1368_s19, 4  ;;  %s1369_s1 = smov 128   ;;  %s282_s22 = int_to_ptr.vmem [resolvable:$true] %s281_s22 }
  0x20   : > { %s1370_s26 = smov 8   ;;  %s1371_s3 = smov [#allocation10]  }
  0x21   : > { %s308_s14 = sshll.u32 %s1371_s3, 4  ;;  %s330_s20 = sshll.u32 %s1640_s6, 4  ;;  %s309_s14 = int_to_ptr.vmem [resolvable:$true] %s308_s14  ;;  %s331_s20 = int_to_ptr.hbm [resolvable:$true] %s330_s20 }
  0x22   : > { %s279_s15 = sshll.u32 %s1652_s2, 4  ;;  %s354_s27 = sshll.u32 %s1642_s8, 4  ;;  %s280_s15 = int_to_ptr.hbm [resolvable:$true] %s279_s15  ;;  %s355_s27 = int_to_ptr.hbm [resolvable:$true] %s354_s27 }
  0x23   : > { %913 = dma.hbm_to_vmem [thread:$0]  (!%p1465_p6), %s280_s15, 2048, %s282_s22, [#allocation6], %s1369_s1, %s1369_s1, %s1370_s26  }
  0x24   : > { %s306_s13 = sshll.u32 %s1653_s4, 4  ;;  %s1372_s15 = smov [#allocation13]   ;;  %s307_s13 = int_to_ptr.hbm [resolvable:$true] %s306_s13 }
  0x25   : > { %919 = dma.hbm_to_vmem [thread:$0]  (!%p1465_p6), %s307_s13, 128, %s309_s14, [#allocation9]  }
  0x26   : > { %s332_s19 = sshll.u32 %s1372_s15, 4  ;;  %s1373_s22 = smov [#allocation16]   ;;  %s333_s19 = int_to_ptr.vmem [resolvable:$true] %s332_s19 }
  0x27   : > { %925 = dma.hbm_to_vmem [thread:$0]  (!%p1465_p6), %s331_s20, 128, %s333_s19, [#allocation12]  }
  0x28   : > { %s356_s28 = sshll.u32 %s1373_s22, 4  ;;  %s841_s29 = sadd.s32 4294967294, %s1360_s12   ;;  %s357_s28 = int_to_ptr.vmem [resolvable:$true] %s356_s28 }
  0x29   : > { %931 = dma.hbm_to_vmem [thread:$0]  (!%p1465_p6), %s355_s27, 128, %s357_s28, [#allocation15]  }
  0x2a   : > { %s1505_s13 = sadd.s32 1, %s1360_s12   ;;  %s36_s26 = sadd.s32 1, %s1356_s11 }
  0x2b   : > { %s33_s1 = ssub.s32 %s1360_s12, %s1505_s13  ;;  %p43_p8 = scmp.ne.s32.totalorder %s1356_s11, %s1352_s10 }
  0x2c   : > { %p34_p7 = scmp.eq.s32.totalorder %s33_s1, 0  ;;  %p44_p9 = scmp.eq.s32.totalorder %s1360_s12, 0 }
  0x2d   : > { %p49_p10 = scmp.ne.s32.totalorder %s1352_s10, %s1348_s30  ;;  %p241_p13 = scmp.eq.s32.totalorder %s1448_s16, 1 }
  0x2e   : > { %s1516_s3 = scalar_select %p34_p7, %s1356_s11, %s36_s26  }
  0x2f   : > { %p1518_p11 = por %p44_p9, %p43_p8  ;;  %p1524_p12 = por %p50_p1, %p49_p10 }
  0x30   : > { %p247_p0 = scmp.eq.s32.totalorder %s841_s29, 1  ;;  %p948_p2 = scmp.lt.s32.totalorder %s1360_s12, 2 }
  0x31   : > { %s367_s18 = sand.u32 1, %s1356_s11   ;;  %p1531_p4 = por %p241_p13, %p43_p8 }
  0x32   : > { %p1535_p6 = por %p247_p0, %p49_p10  ;;  %s852_s24 = sshll.u32 %s367_s18, 3 }
  0x33   : > { %s853_s25 = sshll.u32 %s1360_s12, 3  ;;  %s371_s22 = scalar_lea.vmem [#allocation2], %s852_s24 }
  0x34   : > { %s375_s19 = scalar_lea.hbm %s1634_s0, %s853_s25  ;;  %s379_s28 = sshll.u32 %s371_s22, 4  ;;  %s380_s28 = int_to_ptr.vmem [resolvable:$true] %s379_s28 }
  0x35   : > { %s377_s1 = sshll.u32 %s375_s19, 4  ;;  %p1545_p7 = pnand %p948_p2, %p1518_p11  ;;  %s378_s1 = int_to_ptr.hbm [resolvable:$true] %s377_s1 }
  0x36   : > { %s368_s26 = scalar_lea.sflag [#allocation3], %s367_s18  ;;  %s1248_s2 = sshra.s32 %s378_s1, 4  ;;  %s1249_s2 = int_to_ptr.hbm [resolvable:$true] %s1248_s2 }
  0x37   : > { %s1250_s4 = scalar_lea.hbm %s1249_s2, 8  ;;  %p1252_p9 = pneg %p1545_p7 }
  0x38   : > { %p1251_p8 = scmp.ne.s32.totalorder %s1249_s2, %s1250_s4  ;;  %s1255_s27 = scalar_lea.hbm %s1634_s0, 16 }
  0x39   : > { %p1256_p11 = scmp.lt.s32.totalorder %s1249_s2, %s1634_s0  ;;  %p1257_p0 = scmp.lt.s32.totalorder %s1255_s27, %s1250_s4 }
  0x3a   : > { %p1253_p10 = pnand %p1252_p9, %p1251_p8 }
  0x3b   : > { %p1258_p2 = por %p1257_p0, %p1256_p11 }
  0x3c   : > { %p1254_p13 = pneg %p1253_p10 }
  0x3e   : > { %p1259_p5 = pnand %p1258_p2, %p1254_p13 }
  0x40   : > { %1262 = shalt.err (!%p1259_p5)
}
  0x41   : > { %935 = dma.hbm_to_vmem [thread:$0]  (!%p1545_p7), %s378_s1, 128, %s380_s28, %s368_s26  }
  0x42   : > { %388 = sbr.rel (%p1453_p3) target bundleno = 947 (0x3b3), region = 56  ;;  %s1562_s18 = sand.u32 (!%p1453_p3), 1, %s1352_s10  }
  0x43   : > { %s855_s19 = sshll.u32 (!%p1453_p3), %s1562_s18, 3  ;;  %s391_s22 = scalar_lea.sflag (!%p1453_p3), [#allocation3], %s1562_s18 }
  0x44   : > { %s394_s2 = scalar_lea.vmem (!%p1453_p3), [#allocation2], %s855_s19 }
  0x47   : > { %1323 = dma.done.wait (%p1524_p12), %s391_s22, 128  }
  0x48   : > { %1325 = vsyncadd (%p1524_p12), %s391_s22, 4294967168 }
  0x49   : > { %1327 = dma.done.wait (%p50_p1), [#allocation6], 2560  }
  0x4a   : > { %1329 = vsyncadd (%p50_p1), [#allocation6], 4294964736 }
  0x4b   : > { %1331 = dma.done.wait (%p50_p1), [#allocation9], 256  }
  0x4c   : > { %1333 = vsyncadd (%p50_p1), [#allocation9], 4294967040 }
  0x4d   : > { %1335 = dma.done.wait (%p50_p1), [#allocation12], 256  }
  0x4e   : > { %1337 = vsyncadd (%p50_p1), [#allocation12], 4294967040 }
  0x4f   : > { %1339 = dma.done.wait (%p50_p1), [#allocation15], 256  }
  0x50   : > { %1341 = vsyncadd (%p50_p1), [#allocation15], 4294967040  ;;  %v473_v0 = vld [vmem:[#allocation5 + $0x10] sm:$0xff]  ;;  %v471_v1 = vld [vmem:[#allocation5] sm:$0xff]  ;;  %vm475_vm0 = vcmask 130048   ;;  %s868_s4 = sshll.u32 %s1448_s16, 3 }
  0x51   : > { %493 = vmatpush.msra.mxu0 %v473_v0  ;;  %v1588_v2 = vld [vmem:[%s394_s2] sm:$0xff]  ;;  %v573_v16 = vld [vmem:[#allocation7 + $0x68] sm:$0xff]  ;;  %v572_v17 = vld [vmem:[#allocation7 + $0x60] sm:$0xff]  ;;  %s690_s28 = scalar_lea.hbm %s1643_s9, %s868_s4  ;;  %s469_s1 = scalar_lea.vmem [#allocation17], %s855_s19 }
  0x52   : > { %v575_v14 = vld [vmem:[#allocation7 + $0x78] sm:$0xff]  ;;  %v574_v15 = vld [vmem:[#allocation7 + $0x70] sm:$0xff]  ;;  %v569_v20 = vld [vmem:[#allocation7 + $0x48] sm:$0xff]  ;;  %s692_s29 = sshll.u32 %s469_s1, 4  ;;  %s694_s26 = sshll.u32 %s690_s28, 4  ;;  %s693_s29 = int_to_ptr.vmem [resolvable:$true] %s692_s29  ;;  %s695_s26 = int_to_ptr.hbm [resolvable:$true] %s694_s26 }
  0x53   : > { %494 = vmatpush.msra.mxu0 %v471_v1  ;;  %576 = vmatpush.msra.mxu2 %v575_v14  ;;  %v571_v18 = vld [vmem:[#allocation7 + $0x58] sm:$0xff]  ;;  %v570_v19 = vld [vmem:[#allocation7 + $0x50] sm:$0xff]  ;;  %v568_v21 = vld [vmem:[#allocation7 + $0x40] sm:$0xff]  ;;  %s680_s16 = scalar_lea.sflag [#allocation4], %s1562_s18  ;;  %s1292_s24 = sshra.s32 %s695_s26, 4  ;;  %s1293_s24 = int_to_ptr.hbm [resolvable:$true] %s1292_s24 }
  0x54   : > { %865 = vmatmul.msk.f32.vlgmr.msra.gmra.mxu0 %vm475_vm0, %v1588_v2  ;;  %v567_v22 = vld [vmem:[#allocation7 + $0x38] sm:$0xff]  ;;  %v566_v23 = vld [vmem:[#allocation7 + $0x30] sm:$0xff]  ;;  %v565_v26 = vld [vmem:[#allocation7 + $0x28] sm:$0xff]  ;;  %s1294_s25 = scalar_lea.hbm %s1293_s24, 8  ;;  %s1298_s14 = scalar_lea.hbm %s1643_s9, 16 }
  0x55   : > { %577 = vmatpush.msra.mxu2 %v574_v15  ;;  %v564_v28 = vld [vmem:[#allocation7 + $0x20] sm:$0xff]  ;;  %v563_v30 = vld [vmem:[#allocation7 + $0x18] sm:$0xff]  ;;  %v562_v32 = vld [vmem:[#allocation7 + $0x10] sm:$0xff]  ;;  %p1295_p1 = scmp.ne.s32.totalorder %s1293_s24, %s1294_s25  ;;  %p1299_p12 = scmp.lt.s32.totalorder %s1293_s24, %s1643_s9 }
  0x56   : > { %v561_v35 = vld [vmem:[#allocation7 + $0x8] sm:$0xff]  ;;  %v560_v37 = vld [vmem:[#allocation7] sm:$0xff]  ;;  %v474_v41 = vld [vmem:[#allocation5 + $0x18] sm:$0xff]  ;;  %p1300_p7 = scmp.lt.s32.totalorder %s1298_s14, %s1294_s25 }
  0x57   : > { %578 = vmatpush.msra.mxu2 %v573_v16  ;;  %v472_v42 = vld [vmem:[#allocation5 + $0x8] sm:$0xff]  ;;  %513 = vmatpush.msra.mxu1 %v474_v41  ;;  %v519_v51 = vld [vmem:[#allocation8] sm:$0xff]  ;;  %p1296_p3 = pnand %p1295_p1, %p1531_p4 }
  0x58   : > { %v520_v54 = vld [vmem:[#allocation10] sm:$0xff]  ;;  %p1301_p8 = por %p1300_p7, %p1299_p12 }
  0x59   : > { %579 = vmatpush.msra.mxu2 %v572_v17  ;;  %514 = vmatpush.msra.mxu1 %v472_v42  ;;  %p1297_p5 = pneg %p1296_p3 }
  0x5a   : > { %866 = vmatmul.msk.f32.vlgmr.msra.gmra.mxu1 %vm475_vm0, %v1588_v2 }
  0x5b   : > { %580 = vmatpush.msra.mxu2 %v571_v18  ;;  %p1302_p9 = pnand %p1301_p8, %p1297_p5 }
  0x5d   : > { %581 = vmatpush.msra.mxu2 %v570_v19 }
  0x5f   : > { %582 = vmatpush.msra.mxu2 %v569_v20 }
  0x61   : > { %583 = vmatpush.msra.mxu2 %v568_v21 }
  0x63   : > { %584 = vmatpush.msra.mxu2 %v567_v22 }
  0x65   : > { %585 = vmatpush.msra.mxu2 %v566_v23 }
  0x67   : > { %586 = vmatpush.msra.mxu2 %v565_v26 }
  0x69   : > { %587 = vmatpush.msra.mxu2 %v564_v28 }
  0x6b   : > { %588 = vmatpush.msra.mxu2 %v563_v30 }
  0x6d   : > { %589 = vmatpush.msra.mxu2 %v562_v32 }
  0x6f   : > { %590 = vmatpush.msra.mxu2 %v561_v35 }
  0x71   : > { %591 = vmatpush.msra.mxu2 %v560_v37 }
  0xd1   : > { %v496_v3 = vpop.f32.mrf.mxu0 }
  0xd2   : > { %521 = vadd.xlane.f32.xlu0 %v496_v3 }
  0xd7   : > { %v516_v59 = vpop.f32.mrf.mxu1 }
 0x145   : > { %v522_v4 = vpop.xlane.xlu0 %521 }
 0x146   : > { %v523_v5 = vrot.slane %v522_v4, 4 }
 0x148   : > { %v524_v6 = vadd.f32 %v523_v5, %v522_v4 }
 0x14a   : > { %v525_v7 = vrot.slane %v524_v6, 2 }
 0x14c   : > { %v526_v8 = vadd.f32 %v525_v7, %v524_v6 }
 0x14e   : > { %v527_v9 = vrot.slane %v526_v8, 1 }
 0x150   : > { %v528_v10 = vadd.f32 %v527_v9, %v526_v8 }
 0x152   : > { %v529_v11 = vmul.f32 0.00390625, %v528_v10 }
 0x154   : > { %v1592_v12 = vsub.f32 %v496_v3, %v529_v11  ;;  %v541_v33 = vmul.f32 %v529_v11, %v529_v11 }
 0x156   : > { %v531_v13 = vmul.f32 %v1592_v12, %v1592_v12  ;;  %v542_v38 = vmul.f32 3.0, %v541_v33 }
 0x158   : > { %532 = vadd.xlane.f32.xlu0 %v531_v13 }
 0x1cb   : > { %v533_v24 = vpop.xlane.xlu0 %532 }
 0x1cc   : > { %v534_v25 = vrot.slane %v533_v24, 4 }
 0x1ce   : > { %v535_v27 = vadd.f32 %v534_v25, %v533_v24 }
 0x1d0   : > { %v536_v29 = vrot.slane %v535_v27, 2 }
 0x1d2   : > { %v537_v31 = vadd.f32 %v536_v29, %v535_v27 }
 0x1d4   : > { %v538_v34 = vrot.slane %v537_v31, 1 }
 0x1d6   : > { %v539_v36 = vadd.f32 %v538_v34, %v537_v31 }
 0x1d8   : > { %v540_v39 = vmul.f32 0.00390625, %v539_v36 }
 0x1da   : > { %v543_v40 = vsub.f32 %v540_v39, %v542_v38 }
 0x1dc   : > { %v544_v43 = vmax.f32 %v543_v40, 0.0 }
 0x1de   : > { %v545_v44 = vadd.f32 1e-05, %v544_v43 }
 0x1e0   : > { %1002 = vrsqrt.f32 %v545_v44  ;;  %vm552_vm2 = vweird.f32 %v545_v44 }
 0x1e6   : > { %v1003_v45 = vpop.eup %1002 }
 0x1e7   : > { %v547_v46 = vmul.f32 %v1003_v45, %v545_v44  ;;  %vm553_vm1 = vweird.f32 %v1003_v45 }
 0x1e8   : > { %vm554_vm3 = vmor %vm552_vm2, %vm553_vm1 }
 0x1e9   : > { %v548_v47 = vmul.f32 %v1003_v45, %v547_v46 }
 0x1eb   : > { %v549_v48 = vmul.f32 0.5, %v548_v47 }
 0x1ed   : > { %v550_v49 = vsub.f32 1.5, %v549_v48 }
 0x1ef   : > { %v551_v50 = vmul.f32 %v1003_v45, %v550_v49 }
 0x1f1   : > { %v555_v52 = vsel %vm554_vm3, %v1003_v45, %v551_v50 }
 0x1f2   : > { %v556_v53 = vmul.f32 %v555_v52, %v1592_v12 }
 0x1f4   : > { %v557_v55 = vmul.f32 %v556_v53, %v519_v51 }
 0x1f6   : > { %v558_v56 = vadd.f32 %v557_v55, %v520_v54 }
 0x1f8   : > { %v559_v57 = vmax.f32 %v558_v56, 0.0  ;;  %v596_v56 = vld [vmem:[#allocation11] sm:$0xff] }
 0x1fa   : > { %592 = vmatmul.f32.vlgmr.msra.gmra.mxu2 %v559_v57 }
 0x27d   : > { %v593_v58 = vpop.f32.mrf.mxu2 }
 0x27e   : > { %598 = vadd.xlane.f32.xlu1 %v593_v58 }
 0x286   : > { %638 = vadd.xlane.f32.xlu1 %v516_v59 }
 0x2f1   : > { %v599_v60 = vpop.xlane.xlu1 %598 }
 0x2f2   : > { %v600_v61 = vrot.slane %v599_v60, 4 }
 0x2f4   : > { %v601_v62 = vadd.f32 %v600_v61, %v599_v60  ;;  %v597_v61 = vld [vmem:[#allocation13] sm:$0xff] }
 0x2f6   : > { %v602_v63 = vrot.slane %v601_v62, 2 }
 0x2f8   : > { %v603_v0 = vadd.f32 %v602_v63, %v601_v62  ;;  %v637_v62 = vld [vmem:[#allocation16] sm:$0xff] }
 0x2f9   : > { %v639_v1 = vpop.xlane.xlu1 %638 }
 0x2fa   : > { %v604_v2 = vrot.slane %v603_v0, 1  ;;  %v640_v3 = vrot.slane %v639_v1, 4 }
 0x2fc   : > { %v641_v4 = vadd.f32 %v640_v3, %v639_v1  ;;  %v605_v5 = vadd.f32 %v604_v2, %v603_v0 }
 0x2fe   : > { %v642_v6 = vrot.slane %v641_v4, 2  ;;  %v606_v7 = vmul.f32 0.00390625, %v605_v5 }
 0x300   : > { %v643_v8 = vadd.f32 %v642_v6, %v641_v4  ;;  %v607_v9 = vsub.f32 %v593_v58, %v606_v7  ;;  %v618_v22 = vmul.f32 %v606_v7, %v606_v7  ;;  %v636_v58 = vld [vmem:[#allocation14] sm:$0xff] }
 0x302   : > { %v644_v10 = vrot.slane %v643_v8, 1  ;;  %v608_v11 = vmul.f32 %v607_v9, %v607_v9  ;;  %v619_v27 = vmul.f32 3.0, %v618_v22 }
 0x304   : > { %v645_v12 = vadd.f32 %v644_v10, %v643_v8  ;;  %609 = vadd.xlane.f32.xlu2 %v608_v11 }
 0x306   : > { %v646_v13 = vmul.f32 0.00390625, %v645_v12 }
 0x308   : > { %v647_v14 = vsub.f32 %v516_v59, %v646_v13  ;;  %v658_v32 = vmul.f32 %v646_v13, %v646_v13 }
 0x30a   : > { %v648_v15 = vmul.f32 %v647_v14, %v647_v14  ;;  %v659_v37 = vmul.f32 3.0, %v658_v32 }
 0x30c   : > { %649 = vadd.xlane.f32.xlu2 %v648_v15 }
 0x377   : > { %v610_v16 = vpop.xlane.xlu2 %609 }
 0x378   : > { %v611_v17 = vrot.slane %v610_v16, 4 }
 0x37a   : > { %v612_v18 = vadd.f32 %v611_v17, %v610_v16 }
 0x37c   : > { %v613_v19 = vrot.slane %v612_v18, 2 }
 0x37e   : > { %v614_v20 = vadd.f32 %v613_v19, %v612_v18 }
 0x37f   : > { %v650_v21 = vpop.xlane.xlu2 %649 }
 0x380   : > { %v615_v23 = vrot.slane %v614_v20, 1  ;;  %v651_v24 = vrot.slane %v650_v21, 4 }
 0x382   : > { %v616_v25 = vadd.f32 %v615_v23, %v614_v20  ;;  %v652_v26 = vadd.f32 %v651_v24, %v650_v21 }
 0x384   : > { %v617_v28 = vmul.f32 0.00390625, %v616_v25  ;;  %v653_v29 = vrot.slane %v652_v26, 2 }
 0x386   : > { %v620_v30 = vsub.f32 %v617_v28, %v619_v27  ;;  %v654_v31 = vadd.f32 %v653_v29, %v652_v26 }
 0x388   : > { %v621_v33 = vmax.f32 %v620_v30, 0.0  ;;  %v655_v34 = vrot.slane %v654_v31, 1 }
 0x38a   : > { %v622_v35 = vadd.f32 1e-05, %v621_v33  ;;  %v656_v36 = vadd.f32 %v655_v34, %v654_v31 }
 0x38c   : > { %1004 = vrsqrt.f32 %v622_v35  ;;  %v657_v38 = vmul.f32 0.00390625, %v656_v36  ;;  %vm629_vm5 = vweird.f32 %v622_v35 }
 0x38e   : > { %v660_v39 = vsub.f32 %v657_v38, %v659_v37 }
 0x390   : > { %v661_v40 = vmax.f32 %v660_v39, 0.0 }
 0x392   : > { %v1005_v41 = vpop.eup %1004  ;;  %v662_v42 = vadd.f32 1e-05, %v661_v40 }
 0x393   : > { %v624_v43 = vmul.f32 %v1005_v41, %v622_v35  ;;  %vm630_vm4 = vweird.f32 %v1005_v41 }
 0x394   : > { %1006 = vrsqrt.f32 %v662_v42  ;;  %vm631_vm6 = vmor %vm629_vm5, %vm630_vm4  ;;  %vm669_vm8 = vweird.f32 %v662_v42 }
 0x395   : > { %v625_v44 = vmul.f32 %v1005_v41, %v624_v43 }
 0x397   : > { %v626_v45 = vmul.f32 0.5, %v625_v44 }
 0x399   : > { %v627_v46 = vsub.f32 1.5, %v626_v45 }
 0x39a   : > { %v1007_v47 = vpop.eup %1006 }
 0x39b   : > { %v628_v48 = vmul.f32 %v1005_v41, %v627_v46  ;;  %v664_v49 = vmul.f32 %v1007_v47, %v662_v42  ;;  %vm670_vm7 = vweird.f32 %v1007_v47 }
 0x39c   : > { %vm671_vm9 = vmor %vm669_vm8, %vm670_vm7 }
 0x39d   : > { %v665_v50 = vmul.f32 %v1007_v47, %v664_v49  ;;  %v632_v51 = vsel %vm631_vm6, %v1005_v41, %v628_v48 }
 0x39e   : > { %v633_v54 = vmul.f32 %v632_v51, %v607_v9 }
 0x39f   : > { %v666_v52 = vmul.f32 0.5, %v665_v50 }
 0x3a0   : > { %v634_v59 = vmul.f32 %v633_v54, %v596_v56 }
 0x3a1   : > { %v667_v53 = vsub.f32 1.5, %v666_v52 }
 0x3a2   : > { %v635_v0 = vadd.f32 %v634_v59, %v597_v61 }
 0x3a3   : > { %v668_v55 = vmul.f32 %v1007_v47, %v667_v53 }
 0x3a5   : > { %v672_v57 = vsel %vm671_vm9, %v1007_v47, %v668_v55 }
 0x3a6   : > { %v673_v60 = vmul.f32 %v672_v57, %v647_v14 }
 0x3a8   : > { %v674_v63 = vmul.f32 %v673_v60, %v636_v58 }
 0x3aa   : > { %v675_v1 = vadd.f32 %v674_v63, %v637_v62 }
 0x3ac   : > { %v676_v2 = vadd.f32 %v675_v1, %v635_v0 }
 0x3ae   : > { %v677_v3 = vmax.f32 %v676_v2, 0.0 }
 0x3b0   : > { %678 = vst [vmem:[%s469_s1] sm:$0xff] %v677_v3 }
 0x3b1   : > { %1305 = shalt.err (!%p1302_p9)
}
 0x3b2   : > { %905 = dma.vmem_to_hbm [thread:$0]  (%p1531_p4), %s693_s29, 128, %s695_s26, %s680_s16  }
 0x3b3 PF: > { %s706_s18 = sand.u32 1, %s1348_s30   ;;  %p1659_p10 = scmp.ge.s32.totalorder %s1360_s12, 2 }
 0x3b4   : > { %s707_s2 = scalar_lea.sflag [#allocation4], %s706_s18 }
 0x3b5   : > { %p937_p13 = pnand %p1659_p10, %p1535_p6 }
 0x3b7   : > { %p938_p11 = pneg %p937_p13 }
 0x3b9   : > { %1343 = dma.done.wait (%p938_p11), %s707_s2, 128  }
 0x3ba   : > { %1345 = vsyncadd (%p938_p11), %s707_s2, 4294967168  ;;  %p26_p0 = scmp.ge.s32.totalorder %s1505_s13, 4   ;;  %s1660_s30 = smov %s1352_s10 }
 0x3bb   : > { %s1661_s10 = smov %s1356_s11  ;;  %s1662_s11 = smov %s1516_s3 }
 0x3bc   : > { %s1663_s12 = smov %s1505_s13  ;;  %28 = sbr.rel (!%p26_p0) target bundleno = 14 (0xe), region = 133 }
 0x3c1   :  { %713 = vsyncpa [#allocation3], 1 }
 0x3c2   :  { %715 = vsyncpa [#allocation3 + $0x1], 1 }
 0x3c3   :  { %716 = vsyncpa [#allocation6], 1 }
 0x3c4   :  { %717 = vsyncpa [#allocation9], 1 }
 0x3c5   :  { %718 = vsyncpa [#allocation12], 1 }
 0x3c6   :  { %719 = vsyncpa [#allocation15], 1 }
 0x3c7   :  { %720 = vsyncpa [#allocation4], 1 }
 0x3c8   :  { %722 = vsyncpa [#allocation4 + $0x1], 1 }

// kernel: tpu_custom_call.1
= control target key start
LH: loop header
LB: loop body
LE: loop exit
PB: predicated region body
PF: predicated region fallthrough
CT: control target
= control target key end

     0   :  { %s1634_s0 = inlined_call_operand.hbm [shape: f32[16,16], index: 0, kind: input, shape index: {}]   ;;  %s1635_s1 = inlined_call_operand.hbm [shape: f32[16,256], index: 1, kind: input, shape index: {}]   ;;  %s1636_s2 = inlined_call_operand.hbm [shape: f32[128,128], index: 2, kind: input, shape index: {}]   ;;  %s1637_s3 = inlined_call_operand.hbm [shape: f32[8,128], index: 3, kind: input, shape index: {}]   ;;  %s1638_s4 = inlined_call_operand.hbm [shape: f32[8,128], index: 4, kind: input, shape index: {}]   ;;  %s1639_s5 = inlined_call_operand.hbm [shape: f32[8,128], index: 5, kind: input, shape index: {}]   ;;  %s1640_s6 = inlined_call_operand.hbm [shape: f32[8,128], index: 6, kind: input, shape index: {}]   ;;  %s1641_s7 = inlined_call_operand.hbm [shape: f32[8,128], index: 7, kind: input, shape index: {}]   ;;  %s1642_s8 = inlined_call_operand.hbm [shape: f32[8,128], index: 8, kind: input, shape index: {}]   ;;  %s1643_s9 = inlined_call_operand.hbm [shape: f32[2,8,128], index: 9, kind: output, shape index: {}]  }
   0x1   :  { %1644 = sst [smem:[#allocation24_spill]] %s1635_s1 }
   0x2   :  { %1645 = sst [smem:[#allocation25_spill]] %s1636_s2 }
   0x3   :  { %1646 = sst [smem:[#allocation26_spill]] %s1637_s3 }
   0x4   :  { %1647 = sst [smem:[#allocation27_spill]] %s1638_s4 }
   0x5   :  { %14 = vsyncpa [#allocation3], 0 }
   0x6   :  { %16 = vsyncpa [#allocation3 + $0x1], 0 }
   0x7   :  { %17 = vsyncpa [#allocation6], 0 }
   0x8   :  { %18 = vsyncpa [#allocation9], 0 }
   0x9   :  { %19 = vsyncpa [#allocation12], 0 }
   0xa   :  { %20 = vsyncpa [#allocation15], 0 }
   0xb   :  { %21 = vsyncpa [#allocation4], 0 }
   0xc   :  { %23 = vsyncpa [#allocation4 + $0x1], 0  ;;  %s1424_s30 = smov 0   ;;  %s1426_s10 = smov 0  }
   0xd   :  { %s1428_s11 = smov 0   ;;  %s1430_s12 = smov 0  }
   0xe LB: > { %s1648_s1 = sld [smem:[#allocation24_spill]]  ;;  %s1448_s16 = sadd.s32 4294967295, %s1360_s12   ;;  %s1360_s12 = sphi %s1430_s12, %s1663_s12   ;;  %s1356_s11 = sphi %s1428_s11, %s1662_s11   ;;  %s1352_s10 = sphi %s1426_s10, %s1661_s10   ;;  %s1348_s30 = sphi %s1424_s30, %s1660_s30  }
   0xf   : > { %p842_p0 = scmp.ge.s32.totalorder %s1360_s12, 1  ;;  %p50_p1 = scmp.eq.s32.totalorder %s1448_s16, 0 }
  0x10   : > { %p254_p2 = scmp.lt.s32.totalorder %s1360_s12, 3  ;;  %s1362_s18 = smov [#allocation5]  }
  0x11   : > { %s267_s19 = sshll.u32 %s1362_s18, 4  ;;  %s1650_s3 = sld [smem:[#allocation26_spill]]  ;;  %s268_s19 = int_to_ptr.vmem [resolvable:$true] %s267_s19 }
  0x12   : > { %p1453_p3 = pnand %p842_p0, %p254_p2  ;;  %s318_s26 = sshll.u32 %s1639_s5, 4  ;;  %s319_s26 = int_to_ptr.hbm [resolvable:$true] %s318_s26 }
  0x13   : > { %s1363_s27 = smov [#allocation8]   ;;  %s1364_s29 = smov 256  }
  0x14   : > { %s265_s15 = sshll.u32 %s1648_s1, 4  ;;  %p907_p4 = pneg %p1453_p3  ;;  %s266_s15 = int_to_ptr.hbm [resolvable:$true] %s265_s15 }
  0x15   : > { %s296_s28 = sshll.u32 %s1363_s27, 4  ;;  %s1365_s13 = smov 16   ;;  %s297_s28 = int_to_ptr.vmem [resolvable:$true] %s296_s28 }
  0x16   : > { %p1465_p6 = pnand %p907_p4, %p50_p1  ;;  %s342_s20 = sshll.u32 %s1641_s7, 4  ;;  %s343_s20 = int_to_ptr.hbm [resolvable:$true] %s342_s20 }
  0x17   : > { %s294_s22 = sshll.u32 %s1650_s3, 4  ;;  %s1366_s21 = smov [#allocation11]   ;;  %s295_s22 = int_to_ptr.hbm [resolvable:$true] %s294_s22 }
  0x18   : > { %910 = dma.hbm_to_vmem [thread:$0]  (!%p1465_p6), %s266_s15, 512, %s268_s19, [#allocation6], %s1364_s29, %s1364_s29, %s1365_s13  }
  0x19   : > { %916 = dma.hbm_to_vmem [thread:$0]  (!%p1465_p6), %s295_s22, 128, %s297_s28, [#allocation9]  }
  0x1a   : > { %s320_s1 = sshll.u32 %s1366_s21, 4  ;;  %s1367_s24 = smov [#allocation14]   ;;  %s321_s1 = int_to_ptr.vmem [resolvable:$true] %s320_s1 }
  0x1b   : > { %922 = dma.hbm_to_vmem [thread:$0]  (!%p1465_p6), %s319_s26, 128, %s321_s1, [#allocation12]  }
  0x1c   : > { %s344_s25 = sshll.u32 %s1367_s24, 4  ;;  %s1652_s2 = sld [smem:[#allocation25_spill]]  ;;  %s345_s25 = int_to_ptr.vmem [resolvable:$true] %s344_s25 }
  0x1d   : > { %928 = dma.hbm_to_vmem [thread:$0]  (!%p1465_p6), %s343_s20, 128, %s345_s25, [#allocation15]  }
  0x1e   : > { %s1368_s19 = smov [#allocation7]   ;;  %s1653_s4 = sld [smem:[#allocation27_spill]] }
  0x1f   : > { %s281_s22 = sshll.u32 %s1368_s19, 4  ;;  %s1369_s1 = smov 128   ;;  %s282_s22 = int_to_ptr.vmem [resolvable:$true] %s281_s22 }
  0x20   : > { %s1370_s26 = smov 8   ;;  %s1371_s3 = smov [#allocation10]  }
  0x21   : > { %s308_s14 = sshll.u32 %s1371_s3, 4  ;;  %s330_s20 = sshll.u32 %s1640_s6, 4  ;;  %s309_s14 = int_to_ptr.vmem [resolvable:$true] %s308_s14  ;;  %s331_s20 = int_to_ptr.hbm [resolvable:$true] %s330_s20 }
  0x22   : > { %s279_s15 = sshll.u32 %s1652_s2, 4  ;;  %s354_s27 = sshll.u32 %s1642_s8, 4  ;;  %s280_s15 = int_to_ptr.hbm [resolvable:$true] %s279_s15  ;;  %s355_s27 = int_to_ptr.hbm [resolvable:$true] %s354_s27 }
  0x23   : > { %913 = dma.hbm_to_vmem [thread:$0]  (!%p1465_p6), %s280_s15, 2048, %s282_s22, [#allocation6], %s1369_s1, %s1369_s1, %s1370_s26  }
  0x24   : > { %s306_s13 = sshll.u32 %s1653_s4, 4  ;;  %s1372_s15 = smov [#allocation13]   ;;  %s307_s13 = int_to_ptr.hbm [resolvable:$true] %s306_s13 }
  0x25   : > { %919 = dma.hbm_to_vmem [thread:$0]  (!%p1465_p6), %s307_s13, 128, %s309_s14, [#allocation9]  }
  0x26   : > { %s332_s19 = sshll.u32 %s1372_s15, 4  ;;  %s1373_s22 = smov [#allocation16]   ;;  %s333_s19 = int_to_ptr.vmem [resolvable:$true] %s332_s19 }
  0x27   : > { %925 = dma.hbm_to_vmem [thread:$0]  (!%p1465_p6), %s331_s20, 128, %s333_s19, [#allocation12]  }
  0x28   : > { %s356_s28 = sshll.u32 %s1373_s22, 4  ;;  %s841_s29 = sadd.s32 4294967294, %s1360_s12   ;;  %s357_s28 = int_to_ptr.vmem [resolvable:$true] %s356_s28 }
  0x29   : > { %931 = dma.hbm_to_vmem [thread:$0]  (!%p1465_p6), %s355_s27, 128, %s357_s28, [#allocation15]  }
  0x2a   : > { %s1505_s13 = sadd.s32 1, %s1360_s12   ;;  %s36_s26 = sadd.s32 1, %s1356_s11 }
  0x2b   : > { %s33_s1 = ssub.s32 %s1360_s12, %s1505_s13  ;;  %p43_p8 = scmp.ne.s32.totalorder %s1356_s11, %s1352_s10 }
  0x2c   : > { %p34_p7 = scmp.eq.s32.totalorder %s33_s1, 0  ;;  %p44_p9 = scmp.eq.s32.totalorder %s1360_s12, 0 }
  0x2d   : > { %p49_p10 = scmp.ne.s32.totalorder %s1352_s10, %s1348_s30  ;;  %p241_p13 = scmp.eq.s32.totalorder %s1448_s16, 1 }
  0x2e   : > { %s1516_s3 = scalar_select %p34_p7, %s1356_s11, %s36_s26  }
  0x2f   : > { %p1518_p11 = por %p44_p9, %p43_p8  ;;  %p1524_p12 = por %p50_p1, %p49_p10 }
  0x30   : > { %p247_p0 = scmp.eq.s32.totalorder %s841_s29, 1  ;;  %p948_p2 = scmp.lt.s32.totalorder %s1360_s12, 2 }
  0x31   : > { %s367_s18 = sand.u32 1, %s1356_s11   ;;  %p1531_p4 = por %p241_p13, %p43_p8 }
  0x32   : > { %p1535_p6 = por %p247_p0, %p49_p10  ;;  %s852_s24 = sshll.u32 %s367_s18, 3 }
  0x33   : > { %s853_s25 = sshll.u32 %s1360_s12, 3  ;;  %s371_s22 = scalar_lea.vmem [#allocation2], %s852_s24 }
  0x34   : > { %s375_s19 = scalar_lea.hbm %s1634_s0, %s853_s25  ;;  %s379_s28 = sshll.u32 %s371_s22, 4  ;;  %s380_s28 = int_to_ptr.vmem [resolvable:$true] %s379_s28 }
  0x35   : > { %s377_s1 = sshll.u32 %s375_s19, 4  ;;  %p1545_p7 = pnand %p948_p2, %p1518_p11  ;;  %s378_s1 = int_to_ptr.hbm [resolvable:$true] %s377_s1 }
  0x36   : > { %s368_s26 = scalar_lea.sflag [#allocation3], %s367_s18  ;;  %s1248_s2 = sshra.s32 %s378_s1, 4  ;;  %s1249_s2 = int_to_ptr.hbm [resolvable:$true] %s1248_s2 }
  0x37   : > { %s1250_s4 = scalar_lea.hbm %s1249_s2, 8  ;;  %p1252_p9 = pneg %p1545_p7 }
  0x38   : > { %p1251_p8 = scmp.ne.s32.totalorder %s1249_s2, %s1250_s4  ;;  %s1255_s27 = scalar_lea.hbm %s1634_s0, 16 }
  0x39   : > { %p1256_p11 = scmp.lt.s32.totalorder %s1249_s2, %s1634_s0  ;;  %p1257_p0 = scmp.lt.s32.totalorder %s1255_s27, %s1250_s4 }
  0x3a   : > { %p1253_p10 = pnand %p1252_p9, %p1251_p8 }
  0x3b   : > { %p1258_p2 = por %p1257_p0, %p1256_p11 }
  0x3c   : > { %p1254_p13 = pneg %p1253_p10 }
  0x3e   : > { %p1259_p5 = pnand %p1258_p2, %p1254_p13 }
  0x40   : > { %1262 = shalt.err (!%p1259_p5)
}
  0x41   : > { %935 = dma.hbm_to_vmem [thread:$0]  (!%p1545_p7), %s378_s1, 128, %s380_s28, %s368_s26  }
  0x42   : > { %388 = sbr.rel (%p1453_p3) target bundleno = 947 (0x3b3), region = 56  ;;  %s1562_s18 = sand.u32 (!%p1453_p3), 1, %s1352_s10  }
  0x43   : > { %s855_s19 = sshll.u32 (!%p1453_p3), %s1562_s18, 3  ;;  %s391_s22 = scalar_lea.sflag (!%p1453_p3), [#allocation3], %s1562_s18 }
  0x44   : > { %s394_s2 = scalar_lea.vmem (!%p1453_p3), [#allocation2], %s855_s19 }
  0x47   : > { %1323 = dma.done.wait (%p1524_p12), %s391_s22, 128  }
  0x48   : > { %1325 = vsyncadd (%p1524_p12), %s391_s22, 4294967168 }
  0x49   : > { %1327 = dma.done.wait (%p50_p1), [#allocation6], 2560  }
  0x4a   : > { %1329 = vsyncadd (%p50_p1), [#allocation6], 4294964736 }
  0x4b   : > { %1331 = dma.done.wait (%p50_p1), [#allocation9], 256  }
  0x4c   : > { %1333 = vsyncadd (%p50_p1), [#allocation9], 4294967040 }
  0x4d   : > { %1335 = dma.done.wait (%p50_p1), [#allocation12], 256  }
  0x4e   : > { %1337 = vsyncadd (%p50_p1), [#allocation12], 4294967040 }
  0x4f   : > { %1339 = dma.done.wait (%p50_p1), [#allocation15], 256  }
  0x50   : > { %1341 = vsyncadd (%p50_p1), [#allocation15], 4294967040  ;;  %v473_v0 = vld [vmem:[#allocation5 + $0x10] sm:$0xff]  ;;  %v471_v1 = vld [vmem:[#allocation5] sm:$0xff]  ;;  %vm475_vm0 = vcmask 130048   ;;  %s868_s4 = sshll.u32 %s1448_s16, 3 }
  0x51   : > { %493 = vmatpush.msra.mxu0 %v473_v0  ;;  %v1588_v2 = vld [vmem:[%s394_s2] sm:$0xff]  ;;  %v573_v16 = vld [vmem:[#allocation7 + $0x68] sm:$0xff]  ;;  %v572_v17 = vld [vmem:[#allocation7 + $0x60] sm:$0xff]  ;;  %s690_s28 = scalar_lea.hbm %s1643_s9, %s868_s4  ;;  %s469_s1 = scalar_lea.vmem [#allocation17], %s855_s19 }
  0x52   : > { %v575_v14 = vld [vmem:[#allocation7 + $0x78] sm:$0xff]  ;;  %v574_v15 = vld [vmem:[#allocation7 + $0x70] sm:$0xff]  ;;  %v569_v20 = vld [vmem:[#allocation7 + $0x48] sm:$0xff]  ;;  %s692_s29 = sshll.u32 %s469_s1, 4  ;;  %s694_s26 = sshll.u32 %s690_s28, 4  ;;  %s693_s29 = int_to_ptr.vmem [resolvable:$true] %s692_s29  ;;  %s695_s26 = int_to_ptr.hbm [resolvable:$true] %s694_s26 }
  0x53   : > { %494 = vmatpush.msra.mxu0 %v471_v1  ;;  %576 = vmatpush.msra.mxu2 %v575_v14  ;;  %v571_v18 = vld [vmem:[#allocation7 + $0x58] sm:$0xff]  ;;  %v570_v19 = vld [vmem:[#allocation7 + $0x50] sm:$0xff]  ;;  %v568_v21 = vld [vmem:[#allocation7 + $0x40] sm:$0xff]  ;;  %s680_s16 = scalar_lea.sflag [#allocation4], %s1562_s18  ;;  %s1292_s24 = sshra.s32 %s695_s26, 4  ;;  %s1293_s24 = int_to_ptr.hbm [resolvable:$true] %s1292_s24 }
  0x54   : > { %865 = vmatmul.msk.f32.vlgmr.msra.gmra.mxu0 %vm475_vm0, %v1588_v2  ;;  %v567_v22 = vld [vmem:[#allocation7 + $0x38] sm:$0xff]  ;;  %v566_v23 = vld [vmem:[#allocation7 + $0x30] sm:$0xff]  ;;  %v565_v26 = vld [vmem:[#allocation7 + $0x28] sm:$0xff]  ;;  %s1294_s25 = scalar_lea.hbm %s1293_s24, 8  ;;  %s1298_s14 = scalar_lea.hbm %s1643_s9, 16 }
  0x55   : > { %577 = vmatpush.msra.mxu2 %v574_v15  ;;  %v564_v28 = vld [vmem:[#allocation7 + $0x20] sm:$0xff]  ;;  %v563_v30 = vld [vmem:[#allocation7 + $0x18] sm:$0xff]  ;;  %v562_v32 = vld [vmem:[#allocation7 + $0x10] sm:$0xff]  ;;  %p1295_p1 = scmp.ne.s32.totalorder %s1293_s24, %s1294_s25  ;;  %p1299_p12 = scmp.lt.s32.totalorder %s1293_s24, %s1643_s9 }
  0x56   : > { %v561_v35 = vld [vmem:[#allocation7 + $0x8] sm:$0xff]  ;;  %v560_v37 = vld [vmem:[#allocation7] sm:$0xff]  ;;  %v474_v41 = vld [vmem:[#allocation5 + $0x18] sm:$0xff]  ;;  %p1300_p7 = scmp.lt.s32.totalorder %s1298_s14, %s1294_s25 }
  0x57   : > { %578 = vmatpush.msra.mxu2 %v573_v16  ;;  %v472_v42 = vld [vmem:[#allocation5 + $0x8] sm:$0xff]  ;;  %513 = vmatpush.msra.mxu1 %v474_v41  ;;  %v519_v51 = vld [vmem:[#allocation8] sm:$0xff]  ;;  %p1296_p3 = pnand %p1295_p1, %p1531_p4 }
  0x58   : > { %v520_v54 = vld [vmem:[#allocation10] sm:$0xff]  ;;  %p1301_p8 = por %p1300_p7, %p1299_p12 }
  0x59   : > { %579 = vmatpush.msra.mxu2 %v572_v17  ;;  %514 = vmatpush.msra.mxu1 %v472_v42  ;;  %p1297_p5 = pneg %p1296_p3 }
  0x5a   : > { %866 = vmatmul.msk.f32.vlgmr.msra.gmra.mxu1 %vm475_vm0, %v1588_v2 }
  0x5b   : > { %580 = vmatpush.msra.mxu2 %v571_v18  ;;  %p1302_p9 = pnand %p1301_p8, %p1297_p5 }
  0x5d   : > { %581 = vmatpush.msra.mxu2 %v570_v19 }
  0x5f   : > { %582 = vmatpush.msra.mxu2 %v569_v20 }
  0x61   : > { %583 = vmatpush.msra.mxu2 %v568_v21 }
  0x63   : > { %584 = vmatpush.msra.mxu2 %v567_v22 }
  0x65   : > { %585 = vmatpush.msra.mxu2 %v566_v23 }
  0x67   : > { %586 = vmatpush.msra.mxu2 %v565_v26 }
  0x69   : > { %587 = vmatpush.msra.mxu2 %v564_v28 }
  0x6b   : > { %588 = vmatpush.msra.mxu2 %v563_v30 }
  0x6d   : > { %589 = vmatpush.msra.mxu2 %v562_v32 }
  0x6f   : > { %590 = vmatpush.msra.mxu2 %v561_v35 }
  0x71   : > { %591 = vmatpush.msra.mxu2 %v560_v37 }
  0xd1   : > { %v496_v3 = vpop.f32.mrf.mxu0 }
  0xd2   : > { %521 = vadd.xlane.f32.xlu0 %v496_v3 }
  0xd7   : > { %v516_v59 = vpop.f32.mrf.mxu1 }
 0x145   : > { %v522_v4 = vpop.xlane.xlu0 %521 }
 0x146   : > { %v523_v5 = vrot.slane %v522_v4, 4 }
 0x148   : > { %v524_v6 = vadd.f32 %v523_v5, %v522_v4 }
 0x14a   : > { %v525_v7 = vrot.slane %v524_v6, 2 }
 0x14c   : > { %v526_v8 = vadd.f32 %v525_v7, %v524_v6 }
 0x14e   : > { %v527_v9 = vrot.slane %v526_v8, 1 }
 0x150   : > { %v528_v10 = vadd.f32 %v527_v9, %v526_v8 }
 0x152   : > { %v529_v11 = vmul.f32 0.00390625, %v528_v10 }
 0x154   : > { %v1592_v12 = vsub.f32 %v496_v3, %v529_v11  ;;  %v541_v33 = vmul.f32 %v529_v11, %v529_v11 }
 0x156   : > { %v531_v13 = vmul.f32 %v1592_v12, %v1592_v12  ;;  %v542_v38 = vmul.f32 3.0, %v541_v33 }
 0x158   : > { %532 = vadd.xlane.f32.xlu0 %v531_v13 }
 0x1cb   : > { %v533_v24 = vpop.xlane.xlu0 %532 }
 0x1cc   : > { %v534_v25 = vrot.slane %v533_v24, 4 }
 0x1ce   : > { %v535_v27 = vadd.f32 %v534_v25, %v533_v24 }
 0x1d0   : > { %v536_v29 = vrot.slane %v535_v27, 2 }
 0x1d2   : > { %v537_v31 = vadd.f32 %v536_v29, %v535_v27 }
 0x1d4   : > { %v538_v34 = vrot.slane %v537_v31, 1 }
 0x1d6   : > { %v539_v36 = vadd.f32 %v538_v34, %v537_v31 }
 0x1d8   : > { %v540_v39 = vmul.f32 0.00390625, %v539_v36 }
 0x1da   : > { %v543_v40 = vsub.f32 %v540_v39, %v542_v38 }
 0x1dc   : > { %v544_v43 = vmax.f32 %v543_v40, 0.0 }
 0x1de   : > { %v545_v44 = vadd.f32 1e-05, %v544_v43 }
 0x1e0   : > { %1002 = vrsqrt.f32 %v545_v44  ;;  %vm552_vm2 = vweird.f32 %v545_v44 }
 0x1e6   : > { %v1003_v45 = vpop.eup %1002 }
 0x1e7   : > { %v547_v46 = vmul.f32 %v1003_v45, %v545_v44  ;;  %vm553_vm1 = vweird.f32 %v1003_v45 }
 0x1e8   : > { %vm554_vm3 = vmor %vm552_vm2, %vm553_vm1 }
 0x1e9   : > { %v548_v47 = vmul.f32 %v1003_v45, %v547_v46 }
 0x1eb   : > { %v549_v48 = vmul.f32 0.5, %v548_v47 }
 0x1ed   : > { %v550_v49 = vsub.f32 1.5, %v549_v48 }
 0x1ef   : > { %v551_v50 = vmul.f32 %v1003_v45, %v550_v49 }
 0x1f1   : > { %v555_v52 = vsel %vm554_vm3, %v1003_v45, %v551_v50 }
 0x1f2   : > { %v556_v53 = vmul.f32 %v555_v52, %v1592_v12 }
 0x1f4   : > { %v557_v55 = vmul.f32 %v556_v53, %v519_v51 }
 0x1f6   : > { %v558_v56 = vadd.f32 %v557_v55, %v520_v54 }
 0x1f8   : > { %v559_v57 = vmax.f32 %v558_v56, 0.0  ;;  %v596_v56 = vld [vmem:[#allocation11] sm:$0xff] }
 0x1fa   : > { %592 = vmatmul.f32.vlgmr.msra.gmra.mxu2 %v559_v57 }
 0x27d   : > { %v593_v58 = vpop.f32.mrf.mxu2 }
 0x27e   : > { %598 = vadd.xlane.f32.xlu1 %v593_v58 }
 0x286   : > { %638 = vadd.xlane.f32.xlu1 %v516_v59 }
 0x2f1   : > { %v599_v60 = vpop.xlane.xlu1 %598 }
 0x2f2   : > { %v600_v61 = vrot.slane %v599_v60, 4 }
 0x2f4   : > { %v601_v62 = vadd.f32 %v600_v61, %v599_v60  ;;  %v597_v61 = vld [vmem:[#allocation13] sm:$0xff] }
 0x2f6   : > { %v602_v63 = vrot.slane %v601_v62, 2 }
 0x2f8   : > { %v603_v0 = vadd.f32 %v602_v63, %v601_v62  ;;  %v637_v62 = vld [vmem:[#allocation16] sm:$0xff] }
 0x2f9   : > { %v639_v1 = vpop.xlane.xlu1 %638 }
 0x2fa   : > { %v604_v2 = vrot.slane %v603_v0, 1  ;;  %v640_v3 = vrot.slane %v639_v1, 4 }
 0x2fc   : > { %v641_v4 = vadd.f32 %v640_v3, %v639_v1  ;;  %v605_v5 = vadd.f32 %v604_v2, %v603_v0 }
 0x2fe   : > { %v642_v6 = vrot.slane %v641_v4, 2  ;;  %v606_v7 = vmul.f32 0.00390625, %v605_v5 }
 0x300   : > { %v643_v8 = vadd.f32 %v642_v6, %v641_v4  ;;  %v607_v9 = vsub.f32 %v593_v58, %v606_v7  ;;  %v618_v22 = vmul.f32 %v606_v7, %v606_v7  ;;  %v636_v58 = vld [vmem:[#allocation14] sm:$0xff] }
 0x302   : > { %v644_v10 = vrot.slane %v643_v8, 1  ;;  %v608_v11 = vmul.f32 %v607_v9, %v607_v9  ;;  %v619_v27 = vmul.f32 3.0, %v618_v22 }
 0x304   : > { %v645_v12 = vadd.f32 %v644_v10, %v643_v8  ;;  %609 = vadd.xlane.f32.xlu2 %v608_v11 }
 0x306   : > { %v646_v13 = vmul.f32 0.00390625, %v645_v12 }
 0x308   : > { %v647_v14 = vsub.f32 %v516_v59, %v646_v13  ;;  %v658_v32 = vmul.f32 %v646_v13, %v646_v13 }
 0x30a   : > { %v648_v15 = vmul.f32 %v647_v14, %v647_v14  ;;  %v659_v37 = vmul.f32 3.0, %v658_v32 }
 0x30c   : > { %649 = vadd.xlane.f32.xlu2 %v648_v15 }
 0x377   : > { %v610_v16 = vpop.xlane.xlu2 %609 }
 0x378   : > { %v611_v17 = vrot.slane %v610_v16, 4 }
 0x37a   : > { %v612_v18 = vadd.f32 %v611_v17, %v610_v16 }
 0x37c   : > { %v613_v19 = vrot.slane %v612_v18, 2 }
 0x37e   : > { %v614_v20 = vadd.f32 %v613_v19, %v612_v18 }
 0x37f   : > { %v650_v21 = vpop.xlane.xlu2 %649 }
 0x380   : > { %v615_v23 = vrot.slane %v614_v20, 1  ;;  %v651_v24 = vrot.slane %v650_v21, 4 }
 0x382   : > { %v616_v25 = vadd.f32 %v615_v23, %v614_v20  ;;  %v652_v26 = vadd.f32 %v651_v24, %v650_v21 }
 0x384   : > { %v617_v28 = vmul.f32 0.00390625, %v616_v25  ;;  %v653_v29 = vrot.slane %v652_v26, 2 }
 0x386   : > { %v620_v30 = vsub.f32 %v617_v28, %v619_v27  ;;  %v654_v31 = vadd.f32 %v653_v29, %v652_v26 }
 0x388   : > { %v621_v33 = vmax.f32 %v620_v30, 0.0  ;;  %v655_v34 = vrot.slane %v654_v31, 1 }
 0x38a   : > { %v622_v35 = vadd.f32 1e-05, %v621_v33  ;;  %v656_v36 = vadd.f32 %v655_v34, %v654_v31 }
 0x38c   : > { %1004 = vrsqrt.f32 %v622_v35  ;;  %v657_v38 = vmul.f32 0.00390625, %v656_v36  ;;  %vm629_vm5 = vweird.f32 %v622_v35 }
 0x38e   : > { %v660_v39 = vsub.f32 %v657_v38, %v659_v37 }
 0x390   : > { %v661_v40 = vmax.f32 %v660_v39, 0.0 }
 0x392   : > { %v1005_v41 = vpop.eup %1004  ;;  %v662_v42 = vadd.f32 1e-05, %v661_v40 }
 0x393   : > { %v624_v43 = vmul.f32 %v1005_v41, %v622_v35  ;;  %vm630_vm4 = vweird.f32 %v1005_v41 }
 0x394   : > { %1006 = vrsqrt.f32 %v662_v42  ;;  %vm631_vm6 = vmor %vm629_vm5, %vm630_vm4  ;;  %vm669_vm8 = vweird.f32 %v662_v42 }
 0x395   : > { %v625_v44 = vmul.f32 %v1005_v41, %v624_v43 }
 0x397   : > { %v626_v45 = vmul.f32 0.5, %v625_v44 }
 0x399   : > { %v627_v46 = vsub.f32 1.5, %v626_v45 }
 0x39a   : > { %v1007_v47 = vpop.eup %1006 }
 0x39b   : > { %v628_v48 = vmul.f32 %v1005_v41, %v627_v46  ;;  %v664_v49 = vmul.f32 %v1007_v47, %v662_v42  ;;  %vm670_vm7 = vweird.f32 %v1007_v47 }
 0x39c   : > { %vm671_vm9 = vmor %vm669_vm8, %vm670_vm7 }
 0x39d   : > { %v665_v50 = vmul.f32 %v1007_v47, %v664_v49  ;;  %v632_v51 = vsel %vm631_vm6, %v1005_v41, %v628_v48 }
 0x39e   : > { %v633_v54 = vmul.f32 %v632_v51, %v607_v9 }
 0x39f   : > { %v666_v52 = vmul.f32 0.5, %v665_v50 }
 0x3a0   : > { %v634_v59 = vmul.f32 %v633_v54, %v596_v56 }
 0x3a1   : > { %v667_v53 = vsub.f32 1.5, %v666_v52 }
 0x3a2   : > { %v635_v0 = vadd.f32 %v634_v59, %v597_v61 }
 0x3a3   : > { %v668_v55 = vmul.f32 %v1007_v47, %v667_v53 }
 0x3a5   : > { %v672_v57 = vsel %vm671_vm9, %v1007_v47, %v668_v55 }
 0x3a6   : > { %v673_v60 = vmul.f32 %v672_v57, %v647_v14 }
 0x3a8   : > { %v674_v63 = vmul.f32 %v673_v60, %v636_v58 }
 0x3aa   : > { %v675_v1 = vadd.f32 %v674_v63, %v637_v62 }
 0x3ac   : > { %v676_v2 = vadd.f32 %v675_v1, %v635_v0 }
 0x3ae   : > { %v677_v3 = vmax.f32 %v676_v2, 0.0 }
 0x3b0   : > { %678 = vst [vmem:[%s469_s1] sm:$0xff] %v677_v3 }
 0x3b1   : > { %1305 = shalt.err (!%p1302_p9)
}
 0x3b2   : > { %905 = dma.vmem_to_hbm [thread:$0]  (%p1531_p4), %s693_s29, 128, %s695_s26, %s680_s16  }
 0x3b3 PF: > { %s706_s18 = sand.u32 1, %s1348_s30   ;;  %p1659_p10 = scmp.ge.s32.totalorder %s1360_s12, 2 }
 0x3b4   : > { %s707_s2 = scalar_lea.sflag [#allocation4], %s706_s18 }
 0x3b5   : > { %p937_p13 = pnand %p1659_p10, %p1535_p6 }
 0x3b7   : > { %p938_p11 = pneg %p937_p13 }
 0x3b9   : > { %1343 = dma.done.wait (%p938_p11), %s707_s2, 128  }
 0x3ba   : > { %1345 = vsyncadd (%p938_p11), %s707_s2, 4294967168  ;;  %p26_p0 = scmp.ge.s32.totalorder %s1505_s13, 4   ;;  %s1660_s30 = smov %s1352_s10 }
 0x3bb   : > { %s1661_s10 = smov %s1356_s11  ;;  %s1662_s11 = smov %s1516_s3 }
 0x3bc   : > { %s1663_s12 = smov %s1505_s13  ;;  %28 = sbr.rel (!%p26_p0) target bundleno = 14 (0xe), region = 133 }
 0x3c1   :  { %713 = vsyncpa [#allocation3], 1 }
 0x3c2   :  { %715 = vsyncpa [#allocation3 + $0x1], 1 }
 0x3c3   :  { %716 = vsyncpa [#allocation6], 1 }
 0x3c4   :  { %717 = vsyncpa [#allocation9], 1 }
 0x3c5   :  { %718 = vsyncpa [#allocation12], 1 }
 0x3c6   :  { %719 = vsyncpa [#allocation15], 1 }
 0x3c7   :  { %720 = vsyncpa [#allocation4], 1 }
 0x3c8   :  { %722 = vsyncpa [#allocation4 + $0x1], 1 }

</bundles_post_ra>
